<compile_context>
chip_gen: v5e
topology: v5e:2x2
jax: 0.10.0
libtpu: 0.0.40
codegen_flags: <defaults>
</compile_context>

<pallas_src>
import functools

import jax
import jax.numpy as jnp
from jax import lax
from jax.experimental import pallas as pl
from jax.experimental.pallas import tpu as pltpu


def _round_up(x, m):
    return (x + m - 1) // m * m


def _conv_bn_relu_kernel(x_ref, w_ref, s_ref, b_ref, o_ref, p_ref, acc_ref, *,
                         th, wo, kh_sz, kw_sz, cin_p, stride, dilation, relu6):
    # x_ref  : (1, Hp, Wp, Cin_p)        padded NHWC input, bf16 (full image;
    #                                    index map ignores the row axis so it
    #                                    is DMA'd once per batch element)
    # w_ref  : (KH, KW*Cin_p, Cout_p)    unscaled conv weights, bf16
    # s_ref  : (1, Cout_p)               BN scale  gamma/sqrt(var+eps), f32
    # b_ref  : (1, Cout_p)               BN bias   beta - mean*scale,   f32
    # o_ref  : (1, TH*Wo, Cout_p)        lane-dense output row tile
    # p_ref  : (nbuf, TH, Wo, KW*Cin_p)  im2col slab, double-buffered, bf16
    # acc_ref: (TH*Wo, Cout_p)           f32 accumulator
    r = pl.program_id(1)
    row0 = r * (th * stride)
    if (th * stride) % 8 == 0:
        row0 = pl.multiple_of(row0, 8)
    nbuf = p_ref.shape[0]

    for kh in range(kh_sz):
        buf = kh % nbuf
        row_start = row0 + kh * dilation
        # Pack the KW taps of kernel row kh: tap kw occupies lanes
        # [kw*Cin_p, (kw+1)*Cin_p) of the slab.  Taps are read straight from
        # the resident VMEM input block (no x_tile temporary).
        for kw in range(kw_sz):
            col_start = kw * dilation
            if stride == 1:
                patch = x_ref[0, pl.ds(row_start, th), pl.ds(col_start, wo), :]
            else:
                patch = x_ref[0, pl.ds(row_start, th, stride),
                              pl.ds(col_start, wo, stride), :]
            p_ref[buf, :, :, kw * cin_p:(kw + 1) * cin_p] = patch

        # Leading-dim merge only: (TH, Wo, KW*Cin_p) -> (TH*Wo, KW*Cin_p).
        slab = p_ref[buf].reshape(th * wo, kw_sz * cin_p)

        # MXU pass: slab is the streamed LHS (M=TH*Wo), the small pre-transposed
        # weights are the stationary RHS (K, Cout_p).  Accumulate in f32.
        contrib = jnp.dot(slab, w_ref[kh], preferred_element_type=jnp.float32)
        if kh == 0:
            acc_ref[...] = contrib
        else:
            acc_ref[...] += contrib

    # f32 epilogue: BN scale/bias + ReLU / ReLU6.  Cout_p is a multiple of 128
    # so the store is unmasked lane-dense.
    y = acc_ref[...] * s_ref[...] + b_ref[...]
    y = jnp.maximum(y, 0.0)
    if relu6:
        y = jnp.minimum(y, 6.0)
    o_ref[0] = y.astype(o_ref.dtype)


def _vmem_limit_bytes():
    """Generation-aware VMEM limit (v5e/v6e: 128 MiB physical; v7x: 64 MiB)."""
    cap = None
    try:
        info = pltpu.get_tpu_info()
        cap = getattr(info, "vmem_capacity_bytes", None)
    except Exception:
        cap = None
    if cap is None:
        cap = 64 * 1024 * 1024
    if cap >= 128 * 1024 * 1024:          # v5e / v6e: leave headroom but use it
        return 100 * 1024 * 1024
    return 32 * 1024 * 1024               # v7x: stay at the conservative default


def _pick_row_tile(ho, wo, cap_rows):
    """Pick the output-row tile TH.

    Preferences (in order): TH divides Ho; TH*Wo fits the VMEM-derived cap;
    >= 2 row tiles so there is work to pipeline / shard across 2 TCs (v7x);
    TH*Wo a multiple of 8 (f32 sublane tile); then as large as possible.
    """
    divs = [t for t in range(1, ho + 1) if ho % t == 0]
    fitting = [t for t in divs if t * wo <= cap_rows] or [1]
    multi = [t for t in fitting if ho // t >= 2]
    pool = multi or fitting
    aligned = [t for t in pool if (t * wo) % 8 == 0]
    return max(aligned or pool)


def conv_bn_relu(x_nchw, w_oihw, gamma, beta, running_mean, running_var, *,
                 stride=1, padding=0, dilation=1, groups=1,
                 relu6=False, eps=1e-5, out_dtype=jnp.float32):
    """Pallas implementation of _ConvBNReLU.forward (eval-mode BatchNorm).

    x_nchw : (N, Cin, H, W)      float32
    w_oihw : (Cout, Cin, KH, KW) float32 (Conv2d bias=False, as in the module)
    returns: (N, Cout, Ho, Wo)   out_dtype (default float32)
    """
    if groups != 1:
        raise NotImplementedError("groups != 1 not supported")

    n, cin, h, w = x_nchw.shape
    cout, cin_w, kh_sz, kw_sz = w_oihw.shape
    assert cin_w == cin

    ho = (h + 2 * padding - dilation * (kh_sz - 1) - 1) // stride + 1
    wo = (w + 2 * padding - dilation * (kw_sz - 1) - 1) // stride + 1
    hp, wp = h + 2 * padding, w + 2 * padding

    # ---- channel padding ----
    # Small Cin: keep it (only round to 8); large Cin: pad to a multiple of 128
    # so the per-tap im2col stores land on 128-lane boundaries.
    cin_p = _round_up(cin, 8) if cin < 64 else _round_up(cin, 128)
    # Cout padded to 128 => full MXU N dim and lane-dense output stores.
    cout_p = _round_up(cout, 128)
    out_bytes = 2 if out_dtype == jnp.bfloat16 else 4

    # ---- generation-aware VMEM budget -> row-tile cap ----
    vmem_limit = _vmem_limit_bytes()
    resident = (2 * hp * wp * cin_p * 2                      # double-buffered image
                + 2 * kh_sz * kw_sz * cin_p * cout_p * 2     # weights
                + 2 * 2 * cout_p * 4)                        # scale + bias
    per_row = (2 * kw_sz * cin_p * 2                         # 2x im2col slab, bf16
               + cout_p * 4                                  # f32 accumulator
               + 2 * cout_p * out_bytes)                     # 2x output block
    tile_budget = max(1 << 20, vmem_limit // 3 - resident)
    cap_rows = max(wo, min(8192, tile_budget // per_row))
    th = _pick_row_tile(ho, wo, cap_rows)
    num_r = ho // th
    nbuf = 2 if kh_sz > 1 else 1

    # ---- layout glue (single fused XLA pass over the input) ----
    x_nhwc = jnp.transpose(x_nchw, (0, 2, 3, 1))             # (N, H, W, Cin)
    x_pad = jnp.pad(x_nhwc, ((0, 0), (padding, padding),
                             (padding, padding), (0, cin_p - cin)))
    x_bf16 = x_pad.astype(jnp.bfloat16)                      # (N, Hp, Wp, Cin_p)

    # ---- weights: (Cout,Cin,KH,KW) -> (KH, KW*Cin_p, Cout_p), bf16, UNscaled ----
    w_t = jnp.transpose(w_oihw, (2, 3, 1, 0))                # (KH, KW, Cin, Cout)
    w_t = jnp.pad(w_t, ((0, 0), (0, 0), (0, cin_p - cin), (0, cout_p - cout)))
    w2 = w_t.reshape(kh_sz, kw_sz * cin_p, cout_p).astype(jnp.bfloat16)

    # ---- BN (eval) scale / bias, kept in f32 for the epilogue ----
    scale = gamma / jnp.sqrt(running_var + eps)              # (Cout,)
    bias = beta - running_mean * scale                       # (Cout,)
    scale_p = jnp.pad(scale, (0, cout_p - cout)).reshape(1, cout_p).astype(jnp.float32)
    bias_p = jnp.pad(bias, (0, cout_p - cout)).reshape(1, cout_p).astype(jnp.float32)

    kernel = functools.partial(
        _conv_bn_relu_kernel,
        th=th, wo=wo, kh_sz=kh_sz, kw_sz=kw_sz, cin_p=cin_p,
        stride=stride, dilation=dilation, relu6=relu6)

    flops = 2 * n * ho * wo * kh_sz * kw_sz * cin_p * cout_p
    bytes_accessed = (x_bf16.size * 2 + w2.size * 2
                      + (scale_p.size + bias_p.size) * 4
                      + n * ho * wo * cout_p * out_bytes)

    out_flat = pl.pallas_call(
        kernel,
        out_shape=jax.ShapeDtypeStruct((n, ho * wo, cout_p), out_dtype),
        grid_spec=pltpu.PrefetchScalarGridSpec(
            num_scalar_prefetch=0,
            grid=(n, num_r),
            in_specs=[
                # Full padded image per batch element; same block index across
                # the row axis -> DMA'd once per batch element.
                pl.BlockSpec((1, hp, wp, cin_p), lambda b, r: (b, 0, 0, 0)),
                pl.BlockSpec((kh_sz, kw_sz * cin_p, cout_p),
                             lambda b, r: (0, 0, 0)),
                pl.BlockSpec((1, cout_p), lambda b, r: (0, 0)),
                pl.BlockSpec((1, cout_p), lambda b, r: (0, 0)),
            ],
            out_specs=pl.BlockSpec((1, th * wo, cout_p), lambda b, r: (b, r, 0)),
            scratch_shapes=[
                pltpu.VMEM((nbuf, th, wo, kw_sz * cin_p), jnp.bfloat16),
                pltpu.VMEM((th * wo, cout_p), jnp.float32),
            ],
        ),
        compiler_params=pltpu.CompilerParams(
            dimension_semantics=("parallel", "parallel"),
            vmem_limit_bytes=vmem_limit),
        cost_estimate=pl.CostEstimate(flops=flops, transcendentals=0,
                                      bytes_accessed=bytes_accessed),
    )(x_bf16, w2, scale_p, bias_p)

    # (N, Ho*Wo, Cout_p) -> slice channel pad -> NHWC -> NCHW.
    out = out_flat[:, :, :cout].reshape(n, ho, wo, cout)
    return jnp.transpose(out, (0, 3, 1, 2))


def _reference(x_nchw, w_oihw, gamma, beta, rm, rv, *,
               stride, padding, dilation, relu6, eps=1e-5):
    y = lax.conv_general_dilated(
        x_nchw, w_oihw,
        window_strides=(stride, stride),
        padding=((padding, padding), (padding, padding)),
        rhs_dilation=(dilation, dilation),
        dimension_numbers=("NCHW", "OIHW", "NCHW"))
    scale = (gamma / jnp.sqrt(rv + eps)).reshape(1, -1, 1, 1)
    bias = (beta - rm * gamma / jnp.sqrt(rv + eps)).reshape(1, -1, 1, 1)
    y = y * scale + bias
    y = jnp.maximum(y, 0.0)
    if relu6:
        y = jnp.minimum(y, 6.0)
    return y


if __name__ == "__main__":
    # Module config: _ConvBNReLU(in_channels=4, out_channels=8, kernel_size=3,
    #                            stride=1, padding=1)
    N, CIN, H, W = 2, 4, 16, 16
    COUT, K = 8, 3
    STRIDE, PAD, DIL = 1, 1, 1

    key = jax.random.PRNGKey(0)
    kx, kw_, kg, kb, km, kv = jax.random.split(key, 6)

    x = jax.random.normal(kx, (N, CIN, H, W), dtype=jnp.float32)
    w = jax.random.normal(kw_, (COUT, CIN, K, K), dtype=jnp.float32) * 0.1
    gamma = 1.0 + 0.1 * jax.random.normal(kg, (COUT,), dtype=jnp.float32)
    beta = 0.1 * jax.random.normal(kb, (COUT,), dtype=jnp.float32)
    running_mean = 0.1 * jax.random.normal(km, (COUT,), dtype=jnp.float32)
    running_var = 1.0 + 0.1 * jax.random.uniform(kv, (COUT,), dtype=jnp.float32)

    for relu6 in (False, True):
        out = conv_bn_relu(x, w, gamma, beta, running_mean, running_var,
                           stride=STRIDE, padding=PAD, dilation=DIL,
                           groups=1, relu6=relu6)
        out = jax.block_until_ready(out)
        ref = _reference(x, w, gamma, beta, running_mean, running_var,
                         stride=STRIDE, padding=PAD, dilation=DIL, relu6=relu6)
        assert out.shape == (N, COUT, H, W), out.shape
        # bf16 matmul with f32 accumulation -> relaxed tolerance vs f32 ref.
        max_err = float(jnp.max(jnp.abs(out - ref)))
        assert jnp.allclose(out, ref, atol=5e-2, rtol=5e-2), max_err

    print("KERNEL_OK")
</pallas_src>

<mosaic_0001>
module attributes {stable_mosaic.version = 11 : i64} {
  func.func @_conv_bn_relu_kernel(%arg0: i32, %arg1: i32, %arg2: memref<1x18x18x8xbf16, #tpu.memory_space<vmem>>, %arg3: memref<3x24x128xbf16, #tpu.memory_space<vmem>>, %arg4: memref<1x128xf32, #tpu.memory_space<vmem>>, %arg5: memref<1x128xf32, #tpu.memory_space<vmem>>, %arg6: memref<1x128x128xf32, #tpu.memory_space<vmem>>, %arg7: memref<2x8x16x24xbf16, #tpu.memory_space<vmem>>, %arg8: memref<128x128xf32, #tpu.memory_space<vmem>>) attributes {dimension_semantics = [#tpu.dimension_semantics<parallel>, #tpu.dimension_semantics<parallel>], iteration_bounds = array<i64: 2, 2>, scalar_prefetch = 0 : i64, scratch_operands = 2 : i64, tpu.core_type = #tpu.core_type<tc>, window_params = [{transform_indices = @transform_0, window_bounds = array<i64: 1, 18, 18, 8>}, {pipeline_mode = #tpu.pipeline_mode<synchronous>, transform_indices = @transform_1, window_bounds = array<i64: 3, 24, 128>}, {pipeline_mode = #tpu.pipeline_mode<synchronous>, transform_indices = @transform_2, window_bounds = array<i64: 1, 128>}, {pipeline_mode = #tpu.pipeline_mode<synchronous>, transform_indices = @transform_3, window_bounds = array<i64: 1, 128>}, {transform_indices = @transform_4, window_bounds = array<i64: 1, 128, 128>}]} {
    %c8_i32 = arith.constant 8 : i32
    %0 = arith.muli %arg1, %c8_i32 : i32
    %1 = tpu.assume_multiple %0, 8 : i32
    %c0_i32 = arith.constant 0 : i32
    %2 = arith.addi %1, %c0_i32 : i32
    %c0 = arith.constant 0 : index
    %3 = arith.index_cast %2 : i32 to index
    %c0_0 = arith.constant 0 : index
    %c0_1 = arith.constant 0 : index
    %4 = vector.load %arg2[%c0, %3, %c0_0, %c0_1] : memref<1x18x18x8xbf16, #tpu.memory_space<vmem>>, vector<1x8x16x8xbf16>
    %5 = vector.shape_cast %4 : vector<1x8x16x8xbf16> to vector<8x16x8xbf16>
    %c0_2 = arith.constant 0 : index
    %c0_3 = arith.constant 0 : index
    %c0_4 = arith.constant 0 : index
    %c0_5 = arith.constant 0 : index
    %6 = vector.load %arg7[%c0_2, %c0_3, %c0_4, %c0_5] : memref<2x8x16x24xbf16, #tpu.memory_space<vmem>>, vector<1x8x16x8xbf16>
    %7 = vector.shape_cast %6 : vector<1x8x16x8xbf16> to vector<8x16x8xbf16>
    %8 = vector.shape_cast %5 : vector<8x16x8xbf16> to vector<1x8x16x8xbf16>
    tpu.vector_store %arg7[%c0_2, %c0_3, %c0_4, %c0_5], %8 {strides = array<i32>} : memref<2x8x16x24xbf16, #tpu.memory_space<vmem>>, vector<1x8x16x8xbf16>,
    %c0_6 = arith.constant 0 : index
    %9 = arith.index_cast %2 : i32 to index
    %c1 = arith.constant 1 : index
    %c0_7 = arith.constant 0 : index
    %10 = vector.load %arg2[%c0_6, %9, %c1, %c0_7] : memref<1x18x18x8xbf16, #tpu.memory_space<vmem>>, vector<1x8x16x8xbf16>
    %11 = vector.shape_cast %10 : vector<1x8x16x8xbf16> to vector<8x16x8xbf16>
    %c0_8 = arith.constant 0 : index
    %c0_9 = arith.constant 0 : index
    %c0_10 = arith.constant 0 : index
    %c8 = arith.constant 8 : index
    %12 = vector.load %arg7[%c0_8, %c0_9, %c0_10, %c8] : memref<2x8x16x24xbf16, #tpu.memory_space<vmem>>, vector<1x8x16x8xbf16>
    %13 = vector.shape_cast %12 : vector<1x8x16x8xbf16> to vector<8x16x8xbf16>
    %14 = vector.shape_cast %11 : vector<8x16x8xbf16> to vector<1x8x16x8xbf16>
    tpu.vector_store %arg7[%c0_8, %c0_9, %c0_10, %c8], %14 {strides = array<i32>} : memref<2x8x16x24xbf16, #tpu.memory_space<vmem>>, vector<1x8x16x8xbf16>,
    %c0_11 = arith.constant 0 : index
    %15 = arith.index_cast %2 : i32 to index
    %c2 = arith.constant 2 : index
    %c0_12 = arith.constant 0 : index
    %16 = vector.load %arg2[%c0_11, %15, %c2, %c0_12] : memref<1x18x18x8xbf16, #tpu.memory_space<vmem>>, vector<1x8x16x8xbf16>
    %17 = vector.shape_cast %16 : vector<1x8x16x8xbf16> to vector<8x16x8xbf16>
    %c0_13 = arith.constant 0 : index
    %c0_14 = arith.constant 0 : index
    %c0_15 = arith.constant 0 : index
    %c16 = arith.constant 16 : index
    %18 = vector.load %arg7[%c0_13, %c0_14, %c0_15, %c16] : memref<2x8x16x24xbf16, #tpu.memory_space<vmem>>, vector<1x8x16x8xbf16>
    %19 = vector.shape_cast %18 : vector<1x8x16x8xbf16> to vector<8x16x8xbf16>
    %20 = vector.shape_cast %17 : vector<8x16x8xbf16> to vector<1x8x16x8xbf16>
    tpu.vector_store %arg7[%c0_13, %c0_14, %c0_15, %c16], %20 {strides = array<i32>} : memref<2x8x16x24xbf16, #tpu.memory_space<vmem>>, vector<1x8x16x8xbf16>,
    %c0_16 = arith.constant 0 : index
    %c0_17 = arith.constant 0 : index
    %c0_18 = arith.constant 0 : index
    %c0_19 = arith.constant 0 : index
    %21 = vector.load %arg7[%c0_16, %c0_17, %c0_18, %c0_19] : memref<2x8x16x24xbf16, #tpu.memory_space<vmem>>, vector<1x8x16x24xbf16>
    %22 = vector.shape_cast %21 : vector<1x8x16x24xbf16> to vector<8x16x24xbf16>
    %23 = vector.shape_cast %22 : vector<8x16x24xbf16> to vector<128x24xbf16>
    %c0_20 = arith.constant 0 : index
    %c0_21 = arith.constant 0 : index
    %c0_22 = arith.constant 0 : index
    %24 = vector.load %arg3[%c0_20, %c0_21, %c0_22] : memref<3x24x128xbf16, #tpu.memory_space<vmem>>, vector<1x24x128xbf16>
    %25 = vector.shape_cast %24 : vector<1x24x128xbf16> to vector<24x128xbf16>
    %cst = arith.constant dense<0.000000e+00> : vector<128x128xf32>
    %26 = tpu.matmul %23, %25, %cst {dimension_numbers = #tpu.dot_dimension_numbers<[1], [0], [0], [1], [0, 0, 1, 1], [], []>} : vector<128x24xbf16>, vector<24x128xbf16>, vector<128x128xf32> -> vector<128x128xf32>
    %c0_23 = arith.constant 0 : index
    %c0_24 = arith.constant 0 : index
    %27 = vector.load %arg8[%c0_23, %c0_24] : memref<128x128xf32, #tpu.memory_space<vmem>>, vector<128x128xf32>
    tpu.vector_store %arg8[%c0_23, %c0_24], %26 {strides = array<i32>} : memref<128x128xf32, #tpu.memory_space<vmem>>, vector<128x128xf32>,
    %c1_i32 = arith.constant 1 : i32
    %28 = arith.addi %1, %c1_i32 : i32
    %c0_25 = arith.constant 0 : index
    %29 = arith.index_cast %28 : i32 to index
    %c0_26 = arith.constant 0 : index
    %c0_27 = arith.constant 0 : index
    %30 = vector.load %arg2[%c0_25, %29, %c0_26, %c0_27] : memref<1x18x18x8xbf16, #tpu.memory_space<vmem>>, vector<1x8x16x8xbf16>
    %31 = vector.shape_cast %30 : vector<1x8x16x8xbf16> to vector<8x16x8xbf16>
    %c1_28 = arith.constant 1 : index
    %c0_29 = arith.constant 0 : index
    %c0_30 = arith.constant 0 : index
    %c0_31 = arith.constant 0 : index
    %32 = vector.load %arg7[%c1_28, %c0_29, %c0_30, %c0_31] : memref<2x8x16x24xbf16, #tpu.memory_space<vmem>>, vector<1x8x16x8xbf16>
    %33 = vector.shape_cast %32 : vector<1x8x16x8xbf16> to vector<8x16x8xbf16>
    %34 = vector.shape_cast %31 : vector<8x16x8xbf16> to vector<1x8x16x8xbf16>
    tpu.vector_store %arg7[%c1_28, %c0_29, %c0_30, %c0_31], %34 {strides = array<i32>} : memref<2x8x16x24xbf16, #tpu.memory_space<vmem>>, vector<1x8x16x8xbf16>,
    %c0_32 = arith.constant 0 : index
    %35 = arith.index_cast %28 : i32 to index
    %c1_33 = arith.constant 1 : index
    %c0_34 = arith.constant 0 : index
    %36 = vector.load %arg2[%c0_32, %35, %c1_33, %c0_34] : memref<1x18x18x8xbf16, #tpu.memory_space<vmem>>, vector<1x8x16x8xbf16>
    %37 = vector.shape_cast %36 : vector<1x8x16x8xbf16> to vector<8x16x8xbf16>
    %c1_35 = arith.constant 1 : index
    %c0_36 = arith.constant 0 : index
    %c0_37 = arith.constant 0 : index
    %c8_38 = arith.constant 8 : index
    %38 = vector.load %arg7[%c1_35, %c0_36, %c0_37, %c8_38] : memref<2x8x16x24xbf16, #tpu.memory_space<vmem>>, vector<1x8x16x8xbf16>
    %39 = vector.shape_cast %38 : vector<1x8x16x8xbf16> to vector<8x16x8xbf16>
    %40 = vector.shape_cast %37 : vector<8x16x8xbf16> to vector<1x8x16x8xbf16>
    tpu.vector_store %arg7[%c1_35, %c0_36, %c0_37, %c8_38], %40 {strides = array<i32>} : memref<2x8x16x24xbf16, #tpu.memory_space<vmem>>, vector<1x8x16x8xbf16>,
    %c0_39 = arith.constant 0 : index
    %41 = arith.index_cast %28 : i32 to index
    %c2_40 = arith.constant 2 : index
    %c0_41 = arith.constant 0 : index
    %42 = vector.load %arg2[%c0_39, %41, %c2_40, %c0_41] : memref<1x18x18x8xbf16, #tpu.memory_space<vmem>>, vector<1x8x16x8xbf16>
    %43 = vector.shape_cast %42 : vector<1x8x16x8xbf16> to vector<8x16x8xbf16>
    %c1_42 = arith.constant 1 : index
    %c0_43 = arith.constant 0 : index
    %c0_44 = arith.constant 0 : index
    %c16_45 = arith.constant 16 : index
    %44 = vector.load %arg7[%c1_42, %c0_43, %c0_44, %c16_45] : memref<2x8x16x24xbf16, #tpu.memory_space<vmem>>, vector<1x8x16x8xbf16>
    %45 = vector.shape_cast %44 : vector<1x8x16x8xbf16> to vector<8x16x8xbf16>
    %46 = vector.shape_cast %43 : vector<8x16x8xbf16> to vector<1x8x16x8xbf16>
    tpu.vector_store %arg7[%c1_42, %c0_43, %c0_44, %c16_45], %46 {strides = array<i32>} : memref<2x8x16x24xbf16, #tpu.memory_space<vmem>>, vector<1x8x16x8xbf16>,
    %c1_46 = arith.constant 1 : index
    %c0_47 = arith.constant 0 : index
    %c0_48 = arith.constant 0 : index
    %c0_49 = arith.constant 0 : index
    %47 = vector.load %arg7[%c1_46, %c0_47, %c0_48, %c0_49] : memref<2x8x16x24xbf16, #tpu.memory_space<vmem>>, vector<1x8x16x24xbf16>
    %48 = vector.shape_cast %47 : vector<1x8x16x24xbf16> to vector<8x16x24xbf16>
    %49 = vector.shape_cast %48 : vector<8x16x24xbf16> to vector<128x24xbf16>
    %c1_50 = arith.constant 1 : index
    %c0_51 = arith.constant 0 : index
    %c0_52 = arith.constant 0 : index
    %50 = vector.load %arg3[%c1_50, %c0_51, %c0_52] : memref<3x24x128xbf16, #tpu.memory_space<vmem>>, vector<1x24x128xbf16>
    %51 = vector.shape_cast %50 : vector<1x24x128xbf16> to vector<24x128xbf16>
    %cst_53 = arith.constant dense<0.000000e+00> : vector<128x128xf32>
    %52 = tpu.matmul %49, %51, %cst_53 {dimension_numbers = #tpu.dot_dimension_numbers<[1], [0], [0], [1], [0, 0, 1, 1], [], []>} : vector<128x24xbf16>, vector<24x128xbf16>, vector<128x128xf32> -> vector<128x128xf32>
    %c0_54 = arith.constant 0 : index
    %c0_55 = arith.constant 0 : index
    %53 = vector.load %arg8[%c0_54, %c0_55] : memref<128x128xf32, #tpu.memory_space<vmem>>, vector<128x128xf32>
    %54 = arith.addf %53, %52 : vector<128x128xf32>
    %c0_56 = arith.constant 0 : index
    %c0_57 = arith.constant 0 : index
    %55 = vector.load %arg8[%c0_56, %c0_57] : memref<128x128xf32, #tpu.memory_space<vmem>>, vector<128x128xf32>
    tpu.vector_store %arg8[%c0_56, %c0_57], %54 {strides = array<i32>} : memref<128x128xf32, #tpu.memory_space<vmem>>, vector<128x128xf32>,
    %c2_i32 = arith.constant 2 : i32
    %56 = arith.addi %1, %c2_i32 : i32
    %c0_58 = arith.constant 0 : index
    %57 = arith.index_cast %56 : i32 to index
    %c0_59 = arith.constant 0 : index
    %c0_60 = arith.constant 0 : index
    %58 = vector.load %arg2[%c0_58, %57, %c0_59, %c0_60] : memref<1x18x18x8xbf16, #tpu.memory_space<vmem>>, vector<1x8x16x8xbf16>
    %59 = vector.shape_cast %58 : vector<1x8x16x8xbf16> to vector<8x16x8xbf16>
    %c0_61 = arith.constant 0 : index
    %c0_62 = arith.constant 0 : index
    %c0_63 = arith.constant 0 : index
    %c0_64 = arith.constant 0 : index
    %60 = vector.load %arg7[%c0_61, %c0_62, %c0_63, %c0_64] : memref<2x8x16x24xbf16, #tpu.memory_space<vmem>>, vector<1x8x16x8xbf16>
    %61 = vector.shape_cast %60 : vector<1x8x16x8xbf16> to vector<8x16x8xbf16>
    %62 = vector.shape_cast %59 : vector<8x16x8xbf16> to vector<1x8x16x8xbf16>
    tpu.vector_store %arg7[%c0_61, %c0_62, %c0_63, %c0_64], %62 {strides = array<i32>} : memref<2x8x16x24xbf16, #tpu.memory_space<vmem>>, vector<1x8x16x8xbf16>,
    %c0_65 = arith.constant 0 : index
    %63 = arith.index_cast %56 : i32 to index
    %c1_66 = arith.constant 1 : index
    %c0_67 = arith.constant 0 : index
    %64 = vector.load %arg2[%c0_65, %63, %c1_66, %c0_67] : memref<1x18x18x8xbf16, #tpu.memory_space<vmem>>, vector<1x8x16x8xbf16>
    %65 = vector.shape_cast %64 : vector<1x8x16x8xbf16> to vector<8x16x8xbf16>
    %c0_68 = arith.constant 0 : index
    %c0_69 = arith.constant 0 : index
    %c0_70 = arith.constant 0 : index
    %c8_71 = arith.constant 8 : index
    %66 = vector.load %arg7[%c0_68, %c0_69, %c0_70, %c8_71] : memref<2x8x16x24xbf16, #tpu.memory_space<vmem>>, vector<1x8x16x8xbf16>
    %67 = vector.shape_cast %66 : vector<1x8x16x8xbf16> to vector<8x16x8xbf16>
    %68 = vector.shape_cast %65 : vector<8x16x8xbf16> to vector<1x8x16x8xbf16>
    tpu.vector_store %arg7[%c0_68, %c0_69, %c0_70, %c8_71], %68 {strides = array<i32>} : memref<2x8x16x24xbf16, #tpu.memory_space<vmem>>, vector<1x8x16x8xbf16>,
    %c0_72 = arith.constant 0 : index
    %69 = arith.index_cast %56 : i32 to index
    %c2_73 = arith.constant 2 : index
    %c0_74 = arith.constant 0 : index
    %70 = vector.load %arg2[%c0_72, %69, %c2_73, %c0_74] : memref<1x18x18x8xbf16, #tpu.memory_space<vmem>>, vector<1x8x16x8xbf16>
    %71 = vector.shape_cast %70 : vector<1x8x16x8xbf16> to vector<8x16x8xbf16>
    %c0_75 = arith.constant 0 : index
    %c0_76 = arith.constant 0 : index
    %c0_77 = arith.constant 0 : index
    %c16_78 = arith.constant 16 : index
    %72 = vector.load %arg7[%c0_75, %c0_76, %c0_77, %c16_78] : memref<2x8x16x24xbf16, #tpu.memory_space<vmem>>, vector<1x8x16x8xbf16>
    %73 = vector.shape_cast %72 : vector<1x8x16x8xbf16> to vector<8x16x8xbf16>
    %74 = vector.shape_cast %71 : vector<8x16x8xbf16> to vector<1x8x16x8xbf16>
    tpu.vector_store %arg7[%c0_75, %c0_76, %c0_77, %c16_78], %74 {strides = array<i32>} : memref<2x8x16x24xbf16, #tpu.memory_space<vmem>>, vector<1x8x16x8xbf16>,
    %c0_79 = arith.constant 0 : index
    %c0_80 = arith.constant 0 : index
    %c0_81 = arith.constant 0 : index
    %c0_82 = arith.constant 0 : index
    %75 = vector.load %arg7[%c0_79, %c0_80, %c0_81, %c0_82] : memref<2x8x16x24xbf16, #tpu.memory_space<vmem>>, vector<1x8x16x24xbf16>
    %76 = vector.shape_cast %75 : vector<1x8x16x24xbf16> to vector<8x16x24xbf16>
    %77 = vector.shape_cast %76 : vector<8x16x24xbf16> to vector<128x24xbf16>
    %c2_83 = arith.constant 2 : index
    %c0_84 = arith.constant 0 : index
    %c0_85 = arith.constant 0 : index
    %78 = vector.load %arg3[%c2_83, %c0_84, %c0_85] : memref<3x24x128xbf16, #tpu.memory_space<vmem>>, vector<1x24x128xbf16>
    %79 = vector.shape_cast %78 : vector<1x24x128xbf16> to vector<24x128xbf16>
    %cst_86 = arith.constant dense<0.000000e+00> : vector<128x128xf32>
    %80 = tpu.matmul %77, %79, %cst_86 {dimension_numbers = #tpu.dot_dimension_numbers<[1], [0], [0], [1], [0, 0, 1, 1], [], []>} : vector<128x24xbf16>, vector<24x128xbf16>, vector<128x128xf32> -> vector<128x128xf32>
    %c0_87 = arith.constant 0 : index
    %c0_88 = arith.constant 0 : index
    %81 = vector.load %arg8[%c0_87, %c0_88] : memref<128x128xf32, #tpu.memory_space<vmem>>, vector<128x128xf32>
    %82 = arith.addf %81, %80 : vector<128x128xf32>
    %c0_89 = arith.constant 0 : index
    %c0_90 = arith.constant 0 : index
    %83 = vector.load %arg8[%c0_89, %c0_90] : memref<128x128xf32, #tpu.memory_space<vmem>>, vector<128x128xf32>
    tpu.vector_store %arg8[%c0_89, %c0_90], %82 {strides = array<i32>} : memref<128x128xf32, #tpu.memory_space<vmem>>, vector<128x128xf32>,
    %c0_91 = arith.constant 0 : index
    %c0_92 = arith.constant 0 : index
    %84 = vector.load %arg8[%c0_91, %c0_92] : memref<128x128xf32, #tpu.memory_space<vmem>>, vector<128x128xf32>
    %c0_93 = arith.constant 0 : index
    %c0_94 = arith.constant 0 : index
    %85 = vector.load %arg4[%c0_93, %c0_94] : memref<1x128xf32, #tpu.memory_space<vmem>>, vector<1x128xf32>
    %86 = vector.broadcast %85 : vector<1x128xf32> to vector<128x128xf32>
    %87 = arith.mulf %84, %86 : vector<128x128xf32>
    %c0_95 = arith.constant 0 : index
    %c0_96 = arith.constant 0 : index
    %88 = vector.load %arg5[%c0_95, %c0_96] : memref<1x128xf32, #tpu.memory_space<vmem>>, vector<1x128xf32>
    %89 = vector.broadcast %88 : vector<1x128xf32> to vector<128x128xf32>
    %90 = arith.addf %87, %89 : vector<128x128xf32>
    %cst_97 = arith.constant 0.000000e+00 : f32
    %91 = vector.broadcast %cst_97 : f32 to vector<128x128xf32>
    %92 = arith.maximumf %90, %91 : vector<128x128xf32>
    %c0_98 = arith.constant 0 : index
    %c0_99 = arith.constant 0 : index
    %c0_100 = arith.constant 0 : index
    %93 = vector.load %arg6[%c0_98, %c0_99, %c0_100] : memref<1x128x128xf32, #tpu.memory_space<vmem>>, vector<1x128x128xf32>
    %94 = vector.shape_cast %93 : vector<1x128x128xf32> to vector<128x128xf32>
    %95 = vector.shape_cast %92 : vector<128x128xf32> to vector<1x128x128xf32>
    tpu.vector_store %arg6[%c0_98, %c0_99, %c0_100], %95 {strides = array<i32>} : memref<1x128x128xf32, #tpu.memory_space<vmem>>, vector<1x128x128xf32>,
    return
  }
  func.func @transform_0(%arg0: i32, %arg1: i32) -> (i32, i32, i32, i32) {
    %c0_i32 = arith.constant 0 : i32
    %c0_i32_0 = arith.constant 0 : i32
    %c0_i32_1 = arith.constant 0 : i32
    %c0_i32_2 = arith.constant 0 : i32
    return %arg0, %c0_i32, %c0_i32_0, %c0_i32_1 : i32, i32, i32, i32
  }
  func.func @transform_1(%arg0: i32, %arg1: i32) -> (i32, i32, i32) {
    %c0_i32 = arith.constant 0 : i32
    %c0_i32_0 = arith.constant 0 : i32
    %c0_i32_1 = arith.constant 0 : i32
    %c0_i32_2 = arith.constant 0 : i32
    return %c0_i32, %c0_i32_0, %c0_i32_1 : i32, i32, i32
  }
  func.func @transform_2(%arg0: i32, %arg1: i32) -> (i32, i32) {
    %c0_i32 = arith.constant 0 : i32
    %c0_i32_0 = arith.constant 0 : i32
    %c0_i32_1 = arith.constant 0 : i32
    return %c0_i32, %c0_i32_0 : i32, i32
  }
  func.func @transform_3(%arg0: i32, %arg1: i32) -> (i32, i32) {
    %c0_i32 = arith.constant 0 : i32
    %c0_i32_0 = arith.constant 0 : i32
    %c0_i32_1 = arith.constant 0 : i32
    return %c0_i32, %c0_i32_0 : i32, i32
  }
  func.func @transform_4(%arg0: i32, %arg1: i32) -> (i32, i32, i32) {
    %c0_i32 = arith.constant 0 : i32
    %c0_i32_0 = arith.constant 0 : i32
    return %arg0, %arg1, %c0_i32 : i32, i32, i32
  }
}

</mosaic_0001>

<bundles_post_ra>
// kernel: tpu_custom_call.1
= control target key start
LH: loop header
LB: loop body
LE: loop exit
PB: predicated region body
PF: predicated region fallthrough
CT: control target
= control target key end

     0   :  { %9 = vsyncpa [#allocation5], 0  ;;  %s3928_s0 = inlined_call_operand.vmem [shape: bf16[2,18,18,8], index: 0, kind: input, shape index: {}]   ;;  %s3929_s1 = inlined_call_operand.vmem [shape: bf16[3,24,128], index: 1, kind: input, shape index: {}]   ;;  %s3930_s2 = inlined_call_operand.vmem [shape: f32[1,128], index: 2, kind: input, shape index: {}]   ;;  %s3931_s3 = inlined_call_operand.vmem [shape: f32[1,128], index: 3, kind: input, shape index: {}]   ;;  %s3932_s4 = inlined_call_operand.hbm [shape: f32[2,256,128], index: 4, kind: output, shape index: {}]  }
   0x1   :  { %11 = vsyncpa [#allocation5 + $0x1], 0  ;;  %s2959_s15 = smov 0   ;;  %s2961_s16 = smov 0  }
   0x2   :  { %s2963_s17 = smov 0   ;;  %s2965_s18 = smov 0  }
   0x3   :  { %s2967_s19 = smov 0   ;;  %s2969_s20 = smov 0  }
   0x4   :  { %s2971_s21 = smov 0   ;;  %s2973_s22 = smov 0  }
   0x5 LB: > { %s2414_s23 = sadd.s32 4294967295, %s2929_s22   ;;  %s2415_s24 = sadd.s32 4294967294, %s2929_s22   ;;  %s2929_s22 = sphi %s2973_s22, %s17_s22   ;;  %s2925_s21 = sphi %s2971_s21, %s3945_s21   ;;  %s2921_s20 = sphi %s2969_s20, %s3944_s20   ;;  %s2917_s19 = sphi %s2967_s19, %s3943_s19   ;;  %s2913_s18 = sphi %s2965_s18, %s3942_s18   ;;  %s2909_s17 = sphi %s2963_s17, %s3941_s17   ;;  %s2905_s16 = sphi %s2961_s16, %s3940_s16   ;;  %s2901_s15 = sphi %s2959_s15, %s3939_s15  }
   0x6   : > { %s26_s25 = sadd.s32 1, %s2921_s20  ;;  %s29_s26 = sadd.s32 1, %s2925_s21 }
   0x7   : > { %p27_p0 = scmp.ge.s32.totalorder %s26_s25, 2  ;;  %p137_p1 = scmp.ne.s32.totalorder %s2909_s17, %s2905_s16 }
   0x8   : > { %p138_p2 = scmp.eq.s32.totalorder %s2414_s23, 3  ;;  %p143_p5 = scmp.ne.s32.totalorder %s2905_s16, %s2901_s15 }
   0x9   : > { %s3947_s25 = smov (%p27_p0, %s26_s25), 0  ;;  %s3949_s26 = smov (!%p27_p0, %s29_s26), %s2925_s21 }
   0xa   : > { %s123_s27 = ssub.s32 %s2921_s20, %s3947_s25  ;;  %p3010_p3 = por %p138_p2, %p137_p1 }
   0xb   : > { %p31_p4 = scmp.ge.s32.totalorder %s3949_s26, 2  ;;  %p144_p6 = scmp.eq.s32.totalorder %s2415_s24, 3 }
   0xc   : > { %p2418_p7 = scmp.ge.s32.totalorder %s2929_s22, 1  ;;  %p179_p9 = scmp.lt.s32.totalorder %s2929_s22, 5 }
   0xd   : > { %s3951_s26 = smov (%p31_p4, %s3949_s26), 0  ;;  %p3019_p8 = por %p144_p6, %p143_p5 }
   0xe   : > { %s122_s30 = ssub.s32 %s2925_s21, %s3951_s26  ;;  %s127_s5 = sadd.s32 1, %s2909_s17 }
   0xf   : > { %s124_s6 = sor.u32 %s123_s27, %s122_s30  ;;  %p180_p10 = pnand %p2418_p7, %p179_p9 }
  0x10   : > { %p125_p11 = scmp.eq.s32.totalorder %s124_s6, 0  ;;  %p205_p12 = scmp.lt.s32.totalorder (!%p180_p10), %s2917_s19, 1 }
  0x11   : > { %183 = sbr.rel (%p180_p10) target bundleno = 559 (0x22f), region = 36  ;;  %s2931_s23 = smov (!%p180_p10), 16  }
  0x12   : > { %s3028_s7 = scalar_select %p125_p11, %s2909_s17, %s127_s5  }
  0x13   : > { %s2724_s9 = smul.u32 (!%p180_p10), 96, %s2913_s18  ;;  %s2932_s24 = smov (!%p180_p10), 8  }
  0x14   : > { %s202_s6 = sand.u32 (!%p180_p10), 1, %s2905_s16   ;;  %s2720_s12 = sshll.u32 (!%p180_p10), %s2917_s19, 5 }
  0x16   : > { %s206_s8 = scalar_select %p205_p12, %s2917_s19, 1  ;;  %vm581_vm0 = vcmask 1042432   ;;  %vm582_vm1 = vcmask 1046532   ;;  %vm273_vm3 = vsmask.f32 3328  ;;  %vm232_vm6 = vcmask 60416  }
  0x17   : > { %vm3038_vm2 = vmor %vm581_vm0, %vm582_vm1  ;;  %vm274_vm4 = vsmask.f32 7440  ;;  %vm798_vm7 = vcmask 1043456   ;;  %vm516_vm8 = vcmask 126016   ;;  %vm688_vm9 = vcmask 191616  }
  0x18   : > { %s2758_s10 = smul.u32 216, %s206_s8  ;;  %vm3056_vm5 = vmor %vm273_vm3, %vm274_vm4  ;;  %vm773_vm10 = vcmask 195584   ;;  %s2311_s8 = scalar_lea.sflag [#allocation5], %s202_s6 }
  0x1a   : > { %s209_s13 = scalar_lea.vmem %s3928_s0, %s2758_s10  ;;  %s2419_s10 = sshll.u32 %s202_s6, 7 }
  0x1b   : > { %s3036_s14 = scalar_lea.vmem %s209_s13, %s2724_s9  ;;  %s3787_s11 = scalar_lea.vmem [#allocation4], %s2419_s10 }
  0x1c   : > { %v533_v1 = vld [vmem:[%s3036_s14] sm:$0xe]  ;;  %v534_v2 = vld [vmem:[%s3036_s14 + $0x4] sm:$0xf]  ;;  %v535_v11 = vld [vmem:[%s3036_s14 + $0x8] sm:$0x1] }
  0x1d   : > { %v249_v3 = vld [vmem:[%s3036_s14] sm:$0xf]  ;;  %v2424_v4 = vrot.slane %v533_v1, 9  ;;  %v586_v5 = vrot.slane %v534_v2, 5  ;;  %v250_v6 = vld [vmem:[%s3036_s14 + $0x4] sm:$0xf] }
  0x1e   : > { %v277_v7 = vshrl.u32 %v249_v3, 16  ;;  %v280_v8 = vshll.u32 %v249_v3, 16  ;;  %v286_v9 = vshll.u32 %v250_v6, 16  ;;  %v290_v10 = vshrl.u32 %v250_v6, 16  ;;  %v251_v15 = vld [vmem:[%s3036_s14 + $0x8] sm:$0x1] }
  0x1f   : > { %v587_v12 = vsel %vm3038_vm2, %v2424_v4, %v586_v5  ;;  %v2616_v16 = vld [vmem:[%s3036_s14 + $0x1c] sm:$0xf]  ;;  %v588_v19 = vrot.slane %v586_v5, 4  ;;  %v589_v20 = vrot.slane %v535_v11, 5  ;;  %v2617_v22 = vld [vmem:[%s3036_s14 + $0x20] sm:$0x1] }
  0x20   : > { %v279_v13 = vrot.slane %v277_v7, 4  ;;  %v282_v14 = vrot.slane %v280_v8, 5  ;;  %640 = vrot.lane.b32.xlu1 %v587_v12, %s2931_s23  ;;  %v288_v17 = vrot.slane %v286_v9, 5  ;;  %v292_v18 = vrot.slane %v290_v10, 4  ;;  %v551_v25 = vld [vmem:[%s3036_s14 + $0x48] sm:$0xe] }
  0x21   : > { %v1615_v23 = vshll.u32 %v2616_v16, 16  ;;  %v1619_v24 = vshrl.u32 %v2616_v16, 16  ;;  %v296_v28 = vshll.u32 %v251_v15, 16  ;;  %v3061_v29 = vld [vmem:[%s3036_s14 + $0x4c] sm:$0xf]  ;;  %v2430_v30 = vrot.slane %v551_v25, 9 }
  0x22   : > { %v283_v21 = vor.u32 %v282_v14, %v279_v13  ;;  %v293_v27 = vor.u32 %v292_v18, %v288_v17  ;;  %v2615_v31 = vld [vmem:[%s3036_s14 + $0x18] sm:$0xf]  ;;  %v1625_v35 = vshll.u32 %v2617_v22, 16  ;;  %v628_v36 = vrot.slane %v3061_v29, 5  ;;  %v267_v42 = vld [vmem:[%s3036_s14 + $0x48] sm:$0xf] }
  0x23   : > { %v3064_v33 = vrot.slane %v1615_v23, 5  ;;  %v1621_v34 = vrot.slane %v1619_v24, 4  ;;  %v1606_v37 = vshrl.u32 %v2615_v31, 16  ;;  %v1609_v38 = vshll.u32 %v2615_v31, 16  ;;  %v268_v43 = vld [vmem:[%s3036_s14 + $0x4c] sm:$0xf] }
  0x24   : > { %v284_v32 = vrot.slane %v283_v21, 4  ;;  %v590_v40 = vsel %vm3038_vm2, %v588_v19, %v589_v20  ;;  %v294_v44 = vrot.slane %v293_v27, 4  ;;  %v298_v45 = vrot.slane %v296_v28, 5  ;;  %v2495_v57 = vld [vmem:[%s3036_s14 + $0x10] sm:$0xf] }
  0x25   : > { %v1622_v41 = vor.u32 %v1621_v34, %v3064_v33  ;;  %v629_v46 = vsel %vm3038_vm2, %v2430_v30, %v628_v36  ;;  %v1608_v47 = vrot.slane %v1606_v37, 4  ;;  %v1611_v48 = vrot.slane %v1609_v38, 5  ;;  %v269_v62 = vld [vmem:[%s3036_s14 + $0x50] sm:$0x1]  ;;  %v2639_v1 = vld [vmem:[%s3036_s14 + $0x18] sm:$0xe] }
  0x26   : > { %v289_v39 = vsel %vm3056_vm5, %v284_v32, %v288_v17  ;;  %664 = vrot.lane.b32.xlu2 %v629_v46, %s2931_s23  ;;  %v421_v49 = vshrl.u32 %v267_v42, 16  ;;  %v424_v50 = vshll.u32 %v267_v42, 16  ;;  %v1627_v52 = vrot.slane %v1625_v35, 5  ;;  %v2640_v2 = vld [vmem:[%s3036_s14 + $0x1c] sm:$0xf] }
  0x27   : > { %468 = vrot.lane.b32.xlu0 %v289_v39, %s2932_s24  ;;  %v1623_v51 = vrot.slane %v1622_v41, 4  ;;  %v430_v53 = vshll.u32 %v268_v43, 16  ;;  %v434_v56 = vshrl.u32 %v268_v43, 16  ;;  %v299_v58 = vsel %vm3056_vm5, %v294_v44, %v298_v45  ;;  %v2494_v13 = vld [vmem:[%s3036_s14 + $0xc] sm:$0xf] }
  0x28   : > { %642 = vrot.lane.b32.xlu1 %v590_v40, %s2931_s23  ;;  %v423_v54 = vrot.slane %v421_v49, 4  ;;  %v426_v55 = vrot.slane %v424_v50, 5  ;;  %v1612_v59 = vor.u32 %v1611_v48, %v1608_v47  ;;  %v938_v4 = vshll.u32 %v2495_v57, 16  ;;  %v252_v18 = vld [vmem:[%s3036_s14 + $0xc] sm:$0xf] }
  0x29   : > { %v432_v61 = vrot.slane %v430_v53, 5  ;;  %v1628_v63 = vsel %vm3056_vm5, %v1623_v51, %v1627_v52  ;;  %v942_v5 = vshrl.u32 %v2495_v57, 16  ;;  %v436_v6 = vrot.slane %v434_v56, 4  ;;  %v2496_v19 = vld [vmem:[%s3036_s14 + $0x14] sm:$0x1] }
  0x2a   : > { %v427_v60 = vor.u32 %v426_v55, %v423_v54  ;;  %v440_v7 = vshll.u32 %v269_v62, 16  ;;  %v1613_v8 = vrot.slane %v1612_v59, 4  ;;  %v2663_v11 = vrot.slane %v2639_v1, 9  ;;  %v553_v23 = vld [vmem:[%s3036_s14 + $0x50] sm:$0x1] }
  0x2b   : > { %v437_v10 = vor.u32 %v436_v6, %v432_v61  ;;  %v1911_v12 = vrot.slane %v2640_v2, 5  ;;  %v3095_v14 = vrot.slane %v938_v4, 5  ;;  %v944_v15 = vrot.slane %v942_v5, 4  ;;  %v2641_v32 = vld [vmem:[%s3036_s14 + $0x20] sm:$0x1] }
  0x2c   : > { %v428_v3 = vrot.slane %v427_v60, 4  ;;  %v442_v17 = vrot.slane %v440_v7, 5  ;;  %v1618_v20 = vsel %vm3056_vm5, %v1613_v8, %v3064_v33  ;;  %v929_v21 = vshrl.u32 %v2494_v13, 16  ;;  %v253_v42 = vld [vmem:[%s3036_s14 + $0x10] sm:$0xf] }
  0x2d   : > { %v438_v16 = vrot.slane %v437_v10, 4  ;;  %v932_v22 = vshll.u32 %v2494_v13, 16  ;;  %v301_v24 = vshrl.u32 %v252_v18, 16  ;;  %v304_v25 = vshll.u32 %v252_v18, 16  ;;  %v2518_v50 = vld [vmem:[%s3036_s14 + $0xc] sm:$0xe] }
  0x2e   : > { %v433_v9 = vsel %vm3056_vm5, %v428_v3, %v432_v61  ;;  %v1912_v27 = vsel %vm3038_vm2, %v2663_v11, %v1911_v12  ;;  %v945_v28 = vor.u32 %v944_v15, %v3095_v14  ;;  %v948_v30 = vshll.u32 %v2496_v19, 16  ;;  %v2519_v52 = vld [vmem:[%s3036_s14 + $0x10] sm:$0xf]  ;;  %v2618_v57 = vld [vmem:[%s3036_s14 + $0x24] sm:$0xf] }
  0x2f   : > { %470 = vrot.lane.b32.xlu0 %v299_v58, %s2932_s24  ;;  %492 = vrot.lane.b32.xlu2 %v433_v9, %s2932_s24  ;;  %v443_v31 = vsel %vm3056_vm5, %v438_v16, %v442_v17  ;;  %v630_v33 = vrot.slane %v628_v36, 4  ;;  %v631_v34 = vrot.slane %v553_v23, 5  ;;  %v931_v35 = vrot.slane %v929_v21, 4  ;;  %v537_v55 = vld [vmem:[%s3036_s14 + $0x10] sm:$0xf] }
  0x30   : > { %1799 = vrot.lane.b32.xlu1 %v1628_v63, %s2932_s24  ;;  %v934_v37 = vrot.slane %v932_v22, 5  ;;  %v303_v38 = vrot.slane %v301_v24, 4  ;;  %v306_v39 = vrot.slane %v304_v25, 5  ;;  %v946_v40 = vrot.slane %v945_v28, 4  ;;  %v254_v60 = vld [vmem:[%s3036_s14 + $0x14] sm:$0x1] }
  0x31   : > { %v950_v41 = vrot.slane %v948_v30, 5  ;;  %v1913_v43 = vrot.slane %v1911_v12, 4  ;;  %v1914_v44 = vrot.slane %v2641_v32, 5  ;;  %v632_v29 = vsel %vm3038_vm2, %v630_v33, %v631_v34  ;;  %v270_v61 = vld [vmem:[%s3036_s14 + $0x54] sm:$0xf] }
  0x32   : > { %v935_v36 = vor.u32 %v934_v37, %v931_v35  ;;  %v307_v45 = vor.u32 %v306_v39, %v303_v38  ;;  %v310_v46 = vshll.u32 %v253_v42, 16  ;;  %v314_v48 = vshrl.u32 %v253_v42, 16  ;;  %v2520_v2 = vld [vmem:[%s3036_s14 + $0x14] sm:$0x1]  ;;  %v271_v17 = vld [vmem:[%s3036_s14 + $0x58] sm:$0xf] }
  0x33   : > { %v951_v47 = vsel %vm3056_vm5, %v946_v40, %v950_v41  ;;  %v1915_v49 = vsel %vm3038_vm2, %v1913_v43, %v1914_v44  ;;  %v2542_v56 = vrot.slane %v2518_v50, 9  ;;  %v1234_v59 = vrot.slane %v2519_v52, 5  ;;  %v538_v6 = vld [vmem:[%s3036_s14 + $0x14] sm:$0x1]  ;;  %v2619_v18 = vld [vmem:[%s3036_s14 + $0x28] sm:$0xf] }
  0x34   : > { %v936_v51 = vrot.slane %v935_v36, 4  ;;  %v308_v53 = vrot.slane %v307_v45, 4  ;;  %v312_v54 = vrot.slane %v310_v46, 5  ;;  %v316_v58 = vrot.slane %v314_v48, 4  ;;  %v536_v28 = vld [vmem:[%s3036_s14 + $0xc] sm:$0xe] }
  0x35   : > { %v593_v63 = vrot.slane %v537_v55, 5  ;;  %v1235_v3 = vsel %vm3038_vm2, %v2542_v56, %v1234_v59  ;;  %v1630_v4 = vshrl.u32 %v2618_v57, 16  ;;  %v1633_v5 = vshll.u32 %v2618_v57, 16  ;;  %v272_v39 = vld [vmem:[%s3036_s14 + $0x5c] sm:$0x1] }
  0x36   : > { %v941_v62 = vsel %vm3056_vm5, %v936_v51, %v3095_v14  ;;  %v313_v1 = vsel %vm3056_vm5, %v308_v53, %v312_v54  ;;  %v317_v7 = vor.u32 %v316_v58, %v312_v54  ;;  %v320_v8 = vshll.u32 %v254_v60, 16  ;;  %v555_v40 = vld [vmem:[%s3036_s14 + $0x58] sm:$0xf]  ;;  %v2620_v36 = vld [vmem:[%s3036_s14 + $0x2c] sm:$0x1] }
  0x37   : > { %1797 = vrot.lane.b32.xlu0 %v1618_v20, %s2932_s24  ;;  %494 = vrot.lane.b32.xlu2 %v443_v31, %s2932_s24  ;;  %v445_v9 = vshrl.u32 %v270_v61, 16  ;;  %v448_v10 = vshll.u32 %v270_v61, 16  ;;  %v1236_v11 = vrot.slane %v1234_v59, 4  ;;  %v1237_v12 = vrot.slane %v2520_v2, 5  ;;  %v2497_v44 = vld [vmem:[%s3036_s14 + $0x18] sm:$0xf] }
  0x38   : > { %1965 = vrot.lane.b32.xlu1 %v1912_v27, %s2931_s23  ;;  %v595_v13 = vrot.slane %v593_v63, 4  ;;  %v596_v14 = vrot.slane %v538_v6, 5  ;;  %v1632_v15 = vrot.slane %v1630_v4, 4  ;;  %v1635_v16 = vrot.slane %v1633_v5, 5  ;;  %v556_v55 = vld [vmem:[%s3036_s14 + $0x5c] sm:$0x1] }
  0x39   : > { %v318_v19 = vrot.slane %v317_v7, 4  ;;  %v322_v20 = vrot.slane %v320_v8, 5  ;;  %v447_v21 = vrot.slane %v445_v9, 4  ;;  %v450_v22 = vrot.slane %v448_v10, 5  ;;  %v2642_v9 = vld [vmem:[%s3036_s14 + $0x24] sm:$0xe] }
  0x3a   : > { %v1238_v23 = vsel %vm3038_vm2, %v1236_v11, %v1237_v12  ;;  %v454_v24 = vshll.u32 %v271_v17, 16  ;;  %v458_v25 = vshrl.u32 %v271_v17, 16  ;;  %v597_v27 = vsel %vm3038_vm2, %v595_v13, %v596_v14  ;;  %v2643_v11 = vld [vmem:[%s3036_s14 + $0x28] sm:$0xf] }
  0x3b   : > { %v1639_v30 = vshll.u32 %v2619_v18, 16  ;;  %v1636_v31 = vor.u32 %v1635_v16, %v1632_v15  ;;  %v1643_v32 = vshrl.u32 %v2619_v18, 16  ;;  %v323_v33 = vsel %vm3056_vm5, %v318_v19, %v322_v20  ;;  %v2522_v15 = vld [vmem:[%s3036_s14 + $0x1c] sm:$0xf]  ;;  %v2499_v18 = vld [vmem:[%s3036_s14 + $0x20] sm:$0x1] }
  0x3c   : > { %v451_v34 = vor.u32 %v450_v22, %v447_v21  ;;  %v2425_v35 = vrot.slane %v536_v28, 9  ;;  %v456_v37 = vrot.slane %v454_v24, 5  ;;  %v460_v38 = vrot.slane %v458_v25, 4  ;;  %v255_v19 = vld [vmem:[%s3036_s14 + $0x18] sm:$0xf] }
  0x3d   : > { %v1637_v41 = vrot.slane %v1636_v31, 4  ;;  %v1641_v42 = vrot.slane %v1639_v30, 5  ;;  %v635_v48 = vrot.slane %v555_v40, 5  ;;  %v956_v50 = vshll.u32 %v2497_v44, 16  ;;  %v2644_v22 = vld [vmem:[%s3036_s14 + $0x2c] sm:$0x1] }
  0x3e   : > { %v452_v43 = vrot.slane %v451_v34, 4  ;;  %v594_v45 = vsel %vm3038_vm2, %v2425_v35, %v593_v63  ;;  %v461_v46 = vor.u32 %v460_v38, %v456_v37  ;;  %v1649_v54 = vshll.u32 %v2620_v36, 16  ;;  %v2523_v25 = vld [vmem:[%s3036_s14 + $0x20] sm:$0x1]  ;;  %v256_v34 = vld [vmem:[%s3036_s14 + $0x1c] sm:$0xf] }
  0x3f   : > { %666 = vrot.lane.b32.xlu0 %v632_v29, %s2931_s23  ;;  %1967 = vrot.lane.b32.xlu2 %v1915_v49, %s2931_s23  ;;  %v1645_v29 = vrot.slane %v1643_v32, 4  ;;  %v953_v49 = vshrl.u32 %v2497_v44, 16  ;;  %v1642_v51 = vsel %vm3056_vm5, %v1637_v41, %v1641_v42  ;;  %v958_v59 = vrot.slane %v956_v50, 5  ;;  %v2513_v40 = vld [vmem:[%s3036_s14 + $0x58] sm:$0xf] }
  0x40   : > { %1122 = vrot.lane.b32.xlu1 %v951_v47, %s2932_s24  ;;  %v464_v47 = vshll.u32 %v272_v39, 16  ;;  %v457_v52 = vsel %vm3056_vm5, %v452_v43, %v456_v37  ;;  %v462_v56 = vrot.slane %v461_v46, 4  ;;  %v637_v60 = vrot.slane %v635_v48, 4  ;;  %v2521_v36 = vld [vmem:[%s3036_s14 + $0x18] sm:$0xe] }
  0x41   : > { %v1646_v53 = vor.u32 %v1645_v29, %v1641_v42  ;;  %v955_v58 = vrot.slane %v953_v49, 4  ;;  %v638_v61 = vrot.slane %v556_v55, 5  ;;  %v2664_v14 = vrot.slane %v2642_v9, 9  ;;  %v540_v46 = vld [vmem:[%s3036_s14 + $0x1c] sm:$0xf] }
  0x42   : > { %v466_v57 = vrot.slane %v464_v47, 5  ;;  %v1918_v17 = vrot.slane %v2643_v11, 5  ;;  %v972_v28 = vshll.u32 %v2499_v18, 16  ;;  %v325_v30 = vshrl.u32 %v255_v19, 16  ;;  %v2622_v18 = vld [vmem:[%s3036_s14 + $0x34] sm:$0xf] }
  0x43   : > { %v1647_v63 = vrot.slane %v1646_v53, 4  ;;  %v959_v4 = vor.u32 %v958_v59, %v955_v58  ;;  %v639_v6 = vsel %vm3038_vm2, %v637_v60, %v638_v61  ;;  %v328_v31 = vshll.u32 %v255_v19, 16  ;;  %v257_v53 = vld [vmem:[%s3036_s14 + $0x20] sm:$0x1] }
  0x44   : > { %v467_v2 = vsel %vm3056_vm5, %v462_v56, %v466_v57  ;;  %v1919_v24 = vsel %vm3038_vm2, %v2664_v14, %v1918_v17  ;;  %v1920_v32 = vrot.slane %v1918_v17, 4  ;;  %v1244_v37 = vrot.slane %v2523_v25, 5  ;;  %v228_v17 = vld [vmem:[%s3036_s14 + $0x48] sm:$0xf]  ;;  %v216_v19 = vld [vmem:[%s3036_s14] sm:$0xf] }
  0x45   : > { %v960_v12 = vrot.slane %v959_v4, 4  ;;  %v974_v39 = vrot.slane %v972_v28, 5  ;;  %v327_v41 = vrot.slane %v325_v30, 4  ;;  %v330_v42 = vrot.slane %v328_v31, 5  ;;  %v2621_v4 = vld [vmem:[%s3036_s14 + $0x30] sm:$0xf] }
  0x46   : > { %v334_v43 = vshll.u32 %v256_v34, 16  ;;  %v338_v44 = vshrl.u32 %v256_v34, 16  ;;  %v1082_v47 = vshll.u32 %v2513_v40, 16  ;;  %v2543_v56 = vrot.slane %v2521_v36, 9  ;;  %245 = vst.msk [vmem:[#allocation2 + $0x30] sm:$0xf] %vm232_vm6, %v228_v17 }
  0x47   : > { %1120 = vrot.lane.b32.xlu0 %v941_v62, %s2932_s24  ;;  %1288 = vrot.lane.b32.xlu2 %v1235_v3, %s2931_s23  ;;  %v2498_v62 = vld [vmem:[%s3036_s14 + $0x1c] sm:$0xf]  ;;  %v554_v3 = vld [vmem:[%s3036_s14 + $0x54] sm:$0xe]  ;;  %v600_v58 = vrot.slane %v540_v46, 5  ;;  %v1657_v14 = vshll.u32 %v2621_v4, 16 }
  0x48   : > { %472 = vrot.lane.b32.xlu1 %v313_v1, %s2932_s24  ;;  %v1651_v1 = vrot.slane %v1649_v54, 5  ;;  %v962_v5 = vshll.u32 %v2498_v62, 16  ;;  %v966_v7 = vshrl.u32 %v2498_v62, 16  ;;  %v2431_v10 = vrot.slane %v554_v3, 9  ;;  %233 = vst.msk [vmem:[#allocation2] sm:$0xf] %vm232_vm6, %v216_v19 }
  0x49   : > { %v336_v54 = vrot.slane %v334_v43, 5  ;;  %v340_v55 = vrot.slane %v338_v44, 4  ;;  %v3211_v59 = vrot.slane %v1082_v47, 5  ;;  %v1663_v28 = vshll.u32 %v2622_v18, 16  ;;  %v2536_v34 = vld [vmem:[%s3036_s14 + $0x54] sm:$0xe] }
  0x4a   : > { %v1652_v8 = vsel %vm3056_vm5, %v1647_v63, %v1651_v1  ;;  %v964_v13 = vrot.slane %v962_v5, 5  ;;  %v968_v16 = vrot.slane %v966_v7, 4  ;;  %v636_v20 = vsel %vm3038_vm2, %v2431_v10, %v635_v48  ;;  %v2514_v1 = vld [vmem:[%s3036_s14 + $0x5c] sm:$0x1]  ;;  %v217_v43 = vld [vmem:[%s3036_s14 + $0x4] sm:$0xf] }
  0x4b   : > { %v1086_v48 = vshrl.u32 %v2513_v40, 16  ;;  %v344_v63 = vshll.u32 %v257_v53, 16  ;;  %v341_v3 = vor.u32 %v340_v55, %v336_v54  ;;  %v1667_v30 = vshrl.u32 %v2622_v18, 16  ;;  %v723_v44 = vld [vmem:[%s3929_s1 + $0x8] sm:$0xf] }
  0x4c   : > { %v965_v21 = vsel %vm3056_vm5, %v960_v12, %v964_v13  ;;  %v1665_v40 = vrot.slane %v1663_v28, 5  ;;  %234 = vst.msk [vmem:[#allocation2 + $0x4] sm:$0xf] %vm232_vm6, %v217_v43  ;;  %v2548_v36 = vrot.slane %v2536_v34, 9 }
  0x4d   : > { %v1088_v60 = vrot.slane %v1086_v48, 4  ;;  %v346_v11 = vrot.slane %v344_v63, 5 }
  0x4f   : > { %1290 = vrot.lane.b32.xlu0 %v1238_v23, %s2931_s23  ;;  %474 = vrot.lane.b32.xlu2 %v323_v33, %s2932_s24  ;;  %v1241_v23 = vrot.slane %v2522_v15, 5  ;;  %v1921_v33 = vrot.slane %v2644_v22, 5  ;;  %v1089_v7 = vor.u32 %v1088_v60, %v3211_v59  ;;  %v342_v15 = vrot.slane %v341_v3, 4  ;;  %v2733_v3 = vld [vmem:[%s3929_s1] sm:$0xff] }
  0x50   : > { %646 = vrot.lane.b32.xlu1 %v597_v27, %s2931_s23  ;;  %v969_v27 = vor.u32 %v968_v16, %v964_v13  ;;  %v1654_v13 = vshrl.u32 %v2621_v4, 16  ;;  %v541_v16 = vld [vmem:[%s3036_s14 + $0x20] sm:$0x1] }
  0x51   : > { %v1243_v35 = vrot.slane %v1241_v23, 4  ;;  %v1922_v29 = vsel %vm3038_vm2, %v1920_v32, %v1921_v33  ;;  %v1242_v5 = vsel %vm3038_vm2, %v2543_v56, %v1241_v23  ;;  %v602_v23 = vrot.slane %v600_v58, 4 }
  0x52   : > { %v970_v38 = vrot.slane %v969_v27, 4  ;;  %v1656_v25 = vrot.slane %v1654_v13, 4  ;;  %v1659_v27 = vrot.slane %v1657_v14, 5  ;;  %v347_v31 = vsel %vm3056_vm5, %v342_v15, %v346_v11 }
  0x53   : > { %v1245_v49 = vsel %vm3038_vm2, %v1243_v35, %v1244_v37 }
  0x54   : > { %v975_v50 = vsel %vm3056_vm5, %v970_v38, %v974_v39  ;;  %v1660_v37 = vor.u32 %v1659_v27, %v1656_v25  ;;  %v2537_v38 = vld [vmem:[%s3036_s14 + $0x58] sm:$0xf]  ;;  %v258_v25 = vld [vmem:[%s3036_s14 + $0x24] sm:$0xf] }
  0x55   : > { %v2623_v39 = vld [vmem:[%s3036_s14 + $0x38] sm:$0x1] }
  0x56   : > { %v1661_v47 = vrot.slane %v1660_v37, 4 }
  0x57   : > { %644 = vrot.lane.b32.xlu0 %v594_v45, %s2931_s23  ;;  %496 = vrot.lane.b32.xlu2 %v457_v52, %s2932_s24  ;;  %v539_v45 = vld [vmem:[%s3036_s14 + $0x18] sm:$0xe]  ;;  %v331_v52 = vor.u32 %v330_v42, %v327_v41  ;;  %v1669_v41 = vrot.slane %v1667_v30, 4  ;;  %v3242_v42 = vld [vmem:[%s3036_s14 + $0x34] sm:$0xf] }
  0x58   : > { %1801 = vrot.lane.b32.xlu1 %v1642_v51, %s2932_s24  ;;  %v2512_v51 = vld [vmem:[%s3036_s14 + $0x54] sm:$0xf]  ;;  %v2426_v57 = vrot.slane %v539_v45, 9  ;;  %v1276_v45 = vrot.slane %v2537_v38, 5 }
  0x59   : > { %v1073_v61 = vshrl.u32 %v2512_v51, 16  ;;  %v1076_v62 = vshll.u32 %v2512_v51, 16  ;;  %v1670_v48 = vor.u32 %v1669_v41, %v1665_v40  ;;  %v352_v41 = vshll.u32 %v258_v25, 16 }
  0x5a   : > { %v1277_v56 = vsel %vm3038_vm2, %v2548_v36, %v1276_v45  ;;  %v1278_v4 = vrot.slane %v1276_v45, 4 }
  0x5b   : > { %v1075_v9 = vrot.slane %v1073_v61, 4  ;;  %v1078_v10 = vrot.slane %v1076_v62, 5 }
  0x5d   : > { %v1079_v22 = vor.u32 %v1078_v10, %v1075_v9  ;;  %v2673_v10 = vld [vmem:[%s3929_s1 + $0x20] sm:$0xf] }
  0x5f   : > { %498 = vrot.lane.b32.xlu0 %v467_v2, %s2932_s24  ;;  %1803 = vrot.lane.b32.xlu2 %v1652_v8, %s2932_s24  ;;  %v332_v2 = vrot.slane %v331_v52, 4  ;;  %v1092_v8 = vshll.u32 %v2514_v1, 16  ;;  %v1080_v33 = vrot.slane %v1079_v22, 4  ;;  %v2500_v52 = vld [vmem:[%s3036_s14 + $0x24] sm:$0xf] }
  0x60   : > { %670 = vrot.lane.b32.xlu1 %v639_v6, %s2931_s23  ;;  %v601_v6 = vsel %vm3038_vm2, %v2426_v57, %v600_v58  ;;  %v1666_v57 = vsel %vm3056_vm5, %v1661_v47, %v1665_v40  ;;  %v2538_v58 = vld [vmem:[%s3036_s14 + $0x5c] sm:$0x1]  ;;  %v977_v60 = vshrl.u32 %v2500_v52, 16  ;;  %v980_v61 = vshll.u32 %v2500_v52, 16  ;;  %v2525_v22 = vld [vmem:[%s3036_s14 + $0x28] sm:$0xf] }
  0x61   : > { %v337_v12 = vsel %vm3056_vm5, %v332_v2, %v336_v54  ;;  %v1085_v53 = vsel %vm3056_vm5, %v1080_v33, %v3211_v59  ;;  %v2647_v54 = vld [vmem:[%s3036_s14 + $0x38] sm:$0x1]  ;;  %v1671_v59 = vrot.slane %v1670_v48, 4  ;;  %v2501_v2 = vld [vmem:[%s3036_s14 + $0x28] sm:$0xf]  ;;  %v1248_v34 = vrot.slane %v2525_v22, 5 }
  0x62   : > { %v1928_v1 = vrot.slane %v2647_v54, 5  ;;  %v982_v9 = vrot.slane %v980_v61, 5  ;;  %v986_v14 = vshll.u32 %v2501_v2, 16  ;;  %v990_v15 = vshrl.u32 %v2501_v2, 16  ;;  %v2516_v61 = vld [vmem:[%s3036_s14 + $0x64] sm:$0xf] }
  0x63   : > { %v349_v40 = vshrl.u32 %v258_v25, 16  ;;  %v1250_v2 = vrot.slane %v1248_v34, 4 }
  0x64   : > { %v988_v30 = vrot.slane %v986_v14, 5  ;;  %v219_v14 = vld [vmem:[%s3036_s14 + $0x10] sm:$0xf] }
  0x65   : > { %v351_v54 = vrot.slane %v349_v40, 4  ;;  %236 = vst.msk [vmem:[#allocation2 + $0xc] sm:$0xf] %vm232_vm6, %v219_v14  ;;  %v2517_v40 = vld [vmem:[%s3036_s14 + $0x68] sm:$0x1] }
  0x67   : > { %668 = vrot.lane.b32.xlu0 %v636_v20, %s2931_s23  ;;  %1969 = vrot.lane.b32.xlu2 %v1919_v24, %s2931_s23  ;;  %v1090_v20 = vrot.slane %v1089_v7, 4  ;;  %v603_v24 = vrot.slane %v541_v16, 5  ;;  %v229_v7 = vld [vmem:[%s3036_s14 + $0x4c] sm:$0xf]  ;;  %v2645_v16 = vld [vmem:[%s3036_s14 + $0x30] sm:$0xe] }
  0x68   : > { %1124 = vrot.lane.b32.xlu1 %v965_v21, %s2932_s24  ;;  %v1094_v21 = vrot.slane %v1092_v8, 5  ;;  %246 = vst.msk [vmem:[#allocation2 + $0x34] sm:$0xf] %vm232_vm6, %v229_v7  ;;  %v979_v8 = vrot.slane %v977_v60, 4  ;;  %v2665_v28 = vrot.slane %v2645_v16, 9 }
  0x69   : > { %v604_v35 = vsel %vm3038_vm2, %v602_v23, %v603_v24 }
  0x6a   : > { %v1095_v32 = vsel %vm3056_vm5, %v1090_v20, %v1094_v21  ;;  %v2524_v21 = vld [vmem:[%s3036_s14 + $0x24] sm:$0xe]  ;;  %v983_v24 = vor.u32 %v982_v9, %v979_v8  ;;  %v1106_v9 = vshll.u32 %v2516_v61, 16 }
  0x6b   : > { %v2544_v33 = vrot.slane %v2524_v21, 9 }
  0x6c   : > { %v984_v43 = vrot.slane %v983_v24, 4  ;;  %v1108_v22 = vrot.slane %v1106_v9, 5  ;;  %v2599_v24 = vld [vmem:[%s3036_s14 + $0x18] sm:$0xf] }
  0x6f   : > { %1971 = vrot.lane.b32.xlu0 %v1922_v29, %s2931_s23  ;;  %1126 = vrot.lane.b32.xlu2 %v975_v50, %s2932_s24  ;;  %v769_v29 = vunpack.c.l.b16 %v723_v44  ;;  %v1925_v50 = vrot.slane %v3242_v42, 5  ;;  %v3305_v44 = vld [vmem:[%s3929_s1 + $0x18] sm:$0xff]  ;;  %v989_v42 = vsel %vm3056_vm5, %v984_v43, %v988_v30 }
  0x70   : > { %1294 = vrot.lane.b32.xlu1 %v1245_v49, %s2931_s23  ;;  %v1673_v49 = vshll.u32 %v2623_v39, 16  ;;  %v260_v39 = vld [vmem:[%s3036_s14 + $0x2c] sm:$0x1] }
  0x71   : > { %v771_v51 = vpack.c.b16 %v769_v29, %v769_v29  ;;  %v1927_v63 = vrot.slane %v1925_v50, 4  ;;  %v1926_v47 = vsel %vm3038_vm2, %v2665_v28, %v1925_v50  ;;  %v368_v52 = vshll.u32 %v260_v39, 16  ;;  %v2526_v50 = vld [vmem:[%s3036_s14 + $0x2c] sm:$0x1] }
  0x72   : > { %v1675_v62 = vrot.slane %v1673_v49, 5 }
  0x73   : > { %v800_v55 = vsel %vm798_vm7, %v771_v51, 0  ;;  %v1929_v20 = vsel %vm3038_vm2, %v1927_v63, %v1928_v1  ;;  %v370_v1 = vrot.slane %v368_v52, 5 }
  0x74   : > { %808 = vmatpush.bf16.msra.mxu0 %v800_v55  ;;  %2752 = vmatpush.bf16.msra.mxu3 %v800_v55  ;;  %v1676_v13 = vsel %vm3056_vm5, %v1671_v59, %v1675_v62  ;;  %v354_v55 = vrot.slane %v352_v41, 5  ;;  %v2625_v59 = vld [vmem:[%s3036_s14 + $0x40] sm:$0xf] }
  0x77   : > { %1292 = vrot.lane.b32.xlu0 %v1242_v5, %s2931_s23  ;;  %476 = vrot.lane.b32.xlu2 %v337_v12, %s2932_s24  ;;  %v1279_v5 = vrot.slane %v2538_v58, 5  ;;  %v2094_v12 = vunpack.c.l.b16 %v2673_v10 }
  0x78   : > { %648 = vrot.lane.b32.xlu1 %v601_v6, %s2931_s23  ;;  %v259_v6 = vld [vmem:[%s3036_s14 + $0x28] sm:$0xf]  ;;  %809 = vmatpush.bf16.msra.mxu0 %v2733_v3 }
  0x79   : > { %2753 = vmatpush.bf16.msra.mxu3 %v2733_v3  ;;  %v358_v17 = vshll.u32 %v259_v6, 16  ;;  %v362_v18 = vshrl.u32 %v259_v6, 16  ;;  %v2096_v19 = vpack.c.b16 %v2094_v12, %v2094_v12  ;;  %v1280_v23 = vsel %vm3038_vm2, %v1278_v4, %v1279_v5  ;;  %v2479_v5 = vld [vmem:[%s3036_s14 + $0x10] sm:$0xf]  ;;  %v2478_v6 = vld [vmem:[%s3036_s14 + $0xc] sm:$0xf] }
  0x7a   : > { %v1251_v3 = vrot.slane %v2526_v50, 5  ;;  %v355_v4 = vor.u32 %v354_v55, %v351_v54  ;;  %v1691_v12 = vshrl.u32 %v2625_v59, 16  ;;  %889 = vst.msk [vmem:[#allocation2 + $0x44] sm:$0xf] %vm232_vm6, %v2479_v5 }
  0x7b   : > { %v3292_v27 = vsel %vm798_vm7, %v2096_v19, 0  ;;  %v3299_v37 = vrot.slane %v358_v17, 5  ;;  %v364_v38 = vrot.slane %v362_v18, 4  ;;  %888 = vst.msk [vmem:[#allocation2 + $0x40] sm:$0xf] %vm232_vm6, %v2478_v6  ;;  %v1110_v18 = vshrl.u32 %v2516_v61, 16 }
  0x7c   : > { %2131 = vmatpush.bf16.msra.mxu2 %v3292_v27  ;;  %v356_v17 = vrot.slane %v355_v4, 4  ;;  %v1252_v19 = vsel %vm3038_vm2, %v1250_v2, %v1251_v3  ;;  %v1693_v28 = vrot.slane %v1691_v12, 4  ;;  %v2504_v2 = vld [vmem:[%s3036_s14 + $0x34] sm:$0xf] }
  0x7d   : > { %v365_v51 = vor.u32 %v364_v38, %v3299_v37  ;;  %v1112_v41 = vrot.slane %v1110_v18, 4  ;;  %v1010_v12 = vshll.u32 %v2504_v2, 16  ;;  %v2540_v18 = vld [vmem:[%s3036_s14 + $0x64] sm:$0xf] }
  0x7f   : > { %478 = vrot.lane.b32.xlu0 %v347_v31, %s2932_s24  ;;  %650 = vrot.lane.b32.xlu2 %v604_v35, %s2931_s23  ;;  %v992_v31 = vrot.slane %v990_v15, 4  ;;  %v2502_v35 = vld [vmem:[%s3036_s14 + $0x2c] sm:$0x1]  ;;  %v366_v63 = vrot.slane %v365_v51, 4  ;;  %v1113_v50 = vor.u32 %v1112_v41, %v1108_v22 }
  0x80   : > { %1146 = vrot.lane.b32.xlu1 %v1095_v32, %s2932_s24  ;;  %v665_v46 = vpop.permute.xlu2 %664  ;;  %v2515_v32 = vld [vmem:[%s3036_s14 + $0x60] sm:$0xf]  ;;  %v996_v49 = vshll.u32 %v2502_v35, 16  ;;  %2132 = vmatpush.bf16.msra.mxu2 %v3305_v44  ;;  %v218_v15 = vld [vmem:[%s3036_s14 + $0xc] sm:$0xf] }
  0x81   : > { %v1097_v45 = vshrl.u32 %v2515_v32, 16  ;;  %v993_v48 = vor.u32 %v992_v31, %v988_v30  ;;  %v371_v16 = vsel %vm3056_vm5, %v366_v63, %v370_v1  ;;  %235 = vst.msk [vmem:[#allocation2 + $0x8] sm:$0xf] %vm232_vm6, %v218_v15  ;;  %v2552_v30 = vld [vmem:[%s3929_s1 + $0x14] sm:$0xf]  ;;  %v1114_v4 = vrot.slane %v1113_v50, 4 }
  0x82   : > { %v998_v60 = vrot.slane %v996_v49, 5  ;;  %v1417_v38 = vunpack.c.l.b16 %v2552_v30  ;;  %v2648_v15 = vld [vmem:[%s3036_s14 + $0x3c] sm:$0xe] }
  0x83   : > { %v994_v58 = vrot.slane %v993_v48, 4  ;;  %v544_v48 = vld [vmem:[%s3036_s14 + $0x2c] sm:$0x1] }
  0x84   : > { %v610_v61 = vrot.slane %v544_v48, 5 }
  0x87   : > { %1144 = vrot.lane.b32.xlu0 %v1085_v53, %s2932_s24  ;;  %1805 = vrot.lane.b32.xlu2 %v1666_v57, %s2932_s24  ;;  %v1249_v53 = vsel %vm3038_vm2, %v2544_v33, %v1248_v34  ;;  %v2626_v33 = vld [vmem:[%s3036_s14 + $0x44] sm:$0x1] }
  0x88   : > { %1312 = vrot.lane.b32.xlu1 %v1277_v56, %s2931_s23  ;;  %v1099_v56 = vrot.slane %v1097_v45, 4  ;;  %v230_v45 = vld [vmem:[%s3036_s14 + $0x54] sm:$0xf]  ;;  %v1697_v52 = vshll.u32 %v2626_v33, 16 }
  0x89   : > { %v493_v11 = vpop.permute.xlu2 %492  ;;  %247 = vst.msk [vmem:[#allocation2 + $0x38] sm:$0xf] %vm232_vm6, %v230_v45 }
  0x8a   : > { %529 = vst.msk [vmem:[#allocation2 + $0x30] sm:$0xf] %vm516_vm8, %v493_v11  ;;  %v1687_v11 = vshll.u32 %v2625_v59, 16  ;;  %v1699_v63 = vrot.slane %v1697_v52, 5 }
  0x8b   : > { %701 = vst.msk [vmem:[#allocation2 + $0x30] sm:$0xf] %vm688_vm9, %v665_v46  ;;  %v1100_v46 = vshll.u32 %v2515_v32, 16  ;;  %v543_v32 = vld [vmem:[%s3036_s14 + $0x28] sm:$0xf] }
  0x8c   : > { %v3346_v25 = vrot.slane %v1687_v11, 5  ;;  %v607_v49 = vrot.slane %v543_v32, 5 }
  0x8d   : > { %v1102_v57 = vrot.slane %v1100_v46, 5  ;;  %v1419_v46 = vpack.c.b16 %v1417_v38, %v1417_v38  ;;  %v2505_v38 = vld [vmem:[%s3036_s14 + $0x38] sm:$0x1] }
  0x8e   : > { %v1694_v51 = vor.u32 %v1693_v28, %v3346_v25  ;;  %v2666_v28 = vrot.slane %v2648_v15, 9 }
  0x8f   : > { %1807 = vrot.lane.b32.xlu0 %v1676_v13, %s2932_s24  ;;  %1314 = vrot.lane.b32.xlu2 %v1280_v23, %s2931_s23  ;;  %v1103_v8 = vor.u32 %v1102_v57, %v1099_v56  ;;  %v999_v13 = vsel %vm3056_vm5, %v994_v58, %v998_v60  ;;  %v542_v23 = vld [vmem:[%s3036_s14 + $0x24] sm:$0xe]  ;;  %v1446_v55 = vsel %vm798_vm7, %v1419_v46, 0  ;;  %v1116_v56 = vshll.u32 %v2517_v40, 16  ;;  %v2742_v57 = vld [vmem:[%s3929_s1 + $0xc] sm:$0xff] }
  0x90   : > { %1975 = vrot.lane.b32.xlu1 %v1929_v20, %s2931_s23  ;;  %v2624_v20 = vld [vmem:[%s3036_s14 + $0x3c] sm:$0xf]  ;;  %v2427_v39 = vrot.slane %v542_v23, 9  ;;  %1454 = vmatpush.bf16.msra.mxu1 %v1446_v55  ;;  %v609_v60 = vrot.slane %v607_v49, 4  ;;  %v261_v23 = vld [vmem:[%s3036_s14 + $0x30] sm:$0xf] }
  0x91   : > { %v495_v36 = vpop.permute.xlu2 %494  ;;  %v1104_v21 = vrot.slane %v1103_v8, 4  ;;  %v1678_v34 = vshrl.u32 %v2624_v20, 16  ;;  %v1681_v35 = vshll.u32 %v2624_v20, 16  ;;  %2754 = vmatpush.bf16.msrb.mxu3 %v1446_v55  ;;  %v2600_v58 = vld [vmem:[%s3036_s14 + $0x1c] sm:$0xf]  ;;  %v1118_v5 = vrot.slane %v1116_v56, 5 }
  0x92   : > { %v641_v29 = vpop.permute.xlu1 %640  ;;  %530 = vst.msk [vmem:[#allocation2 + $0x34] sm:$0xf] %vm516_vm8, %v495_v36  ;;  %v611_v9 = vsel %vm3038_vm2, %v609_v60, %v610_v61  ;;  %v2503_v20 = vld [vmem:[%s3036_s14 + $0x30] sm:$0xf]  ;;  %v262_v60 = vld [vmem:[%s3036_s14 + $0x34] sm:$0xf] }
  0x93   : > { %v1683_v54 = vrot.slane %v1681_v35, 5  ;;  %v2541_v35 = vld [vmem:[%s3036_s14 + $0x68] sm:$0x1]  ;;  %v1001_v40 = vshrl.u32 %v2503_v20, 16  ;;  %v1004_v41 = vshll.u32 %v2503_v20, 16 }
  0x94   : > { %1455 = vmatpush.bf16.msra.mxu1 %v2742_v57  ;;  %v1286_v52 = vrot.slane %v2541_v35, 5  ;;  %v2481_v20 = vld [vmem:[%s3036_s14 + $0x1c] sm:$0xf]  ;;  %v547_v35 = vld [vmem:[%s3036_s14 + $0x38] sm:$0x1] }
  0x95   : > { %2755 = vmatpush.bf16.msrb.mxu3 %v2742_v57  ;;  %v1003_v55 = vrot.slane %v1001_v40, 4  ;;  %891 = vst.msk [vmem:[#allocation2 + $0x4c] sm:$0xf] %vm232_vm6, %v2481_v20  ;;  %v3505_v20 = vld [vmem:[%s3036_s14 + $0x4c] sm:$0xf] }
  0x97   : > { %1973 = vrot.lane.b32.xlu0 %v1926_v47, %s2931_s23  ;;  %1128 = vrot.lane.b32.xlu2 %v989_v42, %s2932_s24  ;;  %v361_v47 = vsel %vm3056_vm5, %v356_v17, %v3299_v37  ;;  %v1109_v42 = vsel %vm3056_vm5, %v1104_v21, %v1108_v22  ;;  %v608_v37 = vsel %vm3038_vm2, %v2427_v39, %v607_v49  ;;  %v3403_v21 = vrot.slane %v1010_v12, 5  ;;  %v2612_v49 = vld [vmem:[%s3036_s14 + $0x64] sm:$0xf] }
  0x98   : > { %1296 = vrot.lane.b32.xlu1 %v1249_v53, %s2931_s23  ;;  %v1680_v53 = vrot.slane %v1678_v34, 4  ;;  %v1119_v17 = vsel %vm3056_vm5, %v1114_v4, %v1118_v5 }
  0x99   : > { %v469_v62 = vpop.permute.xlu0 %468  ;;  %v3328_v10 = vpop.permute.xlu2 %1967 }
  0x9a   : > { %517 = vst.msk [vmem:[#allocation2] sm:$0xf] %vm516_vm8, %v469_v62  ;;  %v643_v7 = vpop.permute.xlu1 %642  ;;  %v1695_v62 = vrot.slane %v1694_v51, 4  ;;  %v1684_v1 = vor.u32 %v1683_v54, %v1680_v53  ;;  %v2650_v53 = vld [vmem:[%s3036_s14 + $0x44] sm:$0x1] }
  0x9b   : > { %689 = vst.msk [vmem:[#allocation2] sm:$0xf] %vm688_vm9, %v641_v29  ;;  %v2458_v54 = vld [vmem:[#allocation2 + $0x30] sm:$0xf] }
  0x9c   : > { %v1685_v11 = vrot.slane %v1684_v1, 4  ;;  %v1700_v14 = vsel %vm3056_vm5, %v1695_v62, %v1699_v63  ;;  %v1935_v63 = vrot.slane %v2650_v53, 5 }
  0x9e   : > { %v1690_v34 = vsel %vm3056_vm5, %v1685_v11, %v3346_v25  ;;  %v2527_v11 = vld [vmem:[%s3036_s14 + $0x30] sm:$0xe] }
  0x9f   : > { %1130 = vrot.lane.b32.xlu0 %v999_v13, %s2932_s24  ;;  %1298 = vrot.lane.b32.xlu2 %v1252_v19, %s2931_s23  ;;  %v1014_v13 = vshrl.u32 %v2504_v2, 16  ;;  %v2539_v19 = vld [vmem:[%s3036_s14 + $0x60] sm:$0xe] }
  0xa0   : > { %482 = vrot.lane.b32.xlu1 %v371_v16, %s2932_s24  ;;  %v2649_v16 = vld [vmem:[%s3036_s14 + $0x40] sm:$0xf]  ;;  %v2549_v32 = vrot.slane %v2539_v19, 9 }
  0xa1   : > { %v471_v31 = vpop.permute.xlu0 %470  ;;  %v3358_v36 = vpop.permute.xlu2 %1288  ;;  %v1016_v22 = vrot.slane %v1014_v13, 4  ;;  %v1932_v30 = vrot.slane %v2649_v16, 5 }
  0xa2   : > { %518 = vst.msk [vmem:[#allocation2 + $0x4] sm:$0xf] %vm516_vm8, %v471_v31  ;;  %v1800_v43 = vpop.permute.xlu1 %1799  ;;  %v2434_v29 = vld [vmem:[#allocation2] sm:$0xf]  ;;  %v1283_v31 = vrot.slane %v2540_v18, 5 }
  0xa3   : > { %690 = vst.msk [vmem:[#allocation2 + $0x4] sm:$0xf] %vm688_vm9, %v643_v7  ;;  %v1017_v46 = vor.u32 %v1016_v22, %v3403_v21  ;;  %v1933_v25 = vsel %vm3038_vm2, %v2666_v28, %v1932_v30  ;;  %v1934_v62 = vrot.slane %v1932_v30, 4  ;;  %v2633_v18 = vld [vmem:[%s3036_s14 + $0x60] sm:$0xf] }
  0xa4   : > { %1565 = vst.msk [vmem:[#allocation2] sm:$0xf] %vm232_vm6, %v2599_v24  ;;  %v231_v24 = vld [vmem:[%s3036_s14 + $0x58] sm:$0xf]  ;;  %v1284_v48 = vsel %vm3038_vm2, %v2549_v32, %v1283_v31  ;;  %v1285_v51 = vrot.slane %v1283_v31, 4 }
  0xa5   : > { %248 = vst.msk [vmem:[#allocation2 + $0x3c] sm:$0xf] %vm232_vm6, %v231_v24  ;;  %v2480_v28 = vld [vmem:[%s3036_s14 + $0x18] sm:$0xf] }
  0xa6   : > { %v220_v30 = vld [vmem:[%s3036_s14 + $0x18] sm:$0xf]  ;;  %890 = vst.msk [vmem:[#allocation2 + $0x48] sm:$0xf] %vm232_vm6, %v2480_v28 }
  0xa7   : > { %480 = vrot.lane.b32.xlu0 %v361_v47, %s2932_s24  ;;  %652 = vrot.lane.b32.xlu2 %v608_v37, %s2931_s23  ;;  %v1020_v47 = vshll.u32 %v2505_v38, 16  ;;  %237 = vst.msk [vmem:[#allocation2 + $0x10] sm:$0xf] %vm232_vm6, %v220_v30 }
  0xa8   : > { %1148 = vrot.lane.b32.xlu1 %v1109_v42, %s2932_s24  ;;  %v1006_v42 = vrot.slane %v1004_v41, 5 }
  0xa9   : > { %v1798_v59 = vpop.permute.xlu0 %1797  ;;  %v475_v8 = vpop.permute.xlu2 %474 }
  0xaa   : > { %v2725_v3 = vld [vmem:[#allocation2] sm:$0xf0]  ;;  %1845 = vst.msk [vmem:[#allocation2] sm:$0xf] %vm516_vm8, %v1798_v59  ;;  %v1966_v6 = vpop.permute.xlu1 %1965  ;;  %v1022_v59 = vrot.slane %v1020_v47, 5  ;;  %v1007_v4 = vor.u32 %v1006_v42, %v1003_v55  ;;  %v617_v47 = vrot.slane %v547_v35, 5 }
  0xab   : > { %1566 = vst.msk [vmem:[#allocation2 + $0x4] sm:$0xf] %vm232_vm6, %v2600_v58  ;;  %v2435_v7 = vor.u32 %v2725_v3, %v2434_v29  ;;  %v376_v29 = vshll.u32 %v261_v23, 16  ;;  %v1018_v58 = vrot.slane %v1017_v46, 4  ;;  %v1287_v3 = vsel %vm3038_vm2, %v1285_v51, %v1286_v52  ;;  %v2634_v52 = vld [vmem:[%s3036_s14 + $0x64] sm:$0xf] }
  0xac   : > { %1846 = vst.msk [vmem:[#allocation2 + $0x4] sm:$0xf] %vm516_vm8, %v1800_v43  ;;  %v373_v43 = vshrl.u32 %v261_v23, 16  ;;  %v1008_v12 = vrot.slane %v1007_v4, 4  ;;  %v2529_v23 = vld [vmem:[%s3036_s14 + $0x38] sm:$0x1] }
  0xad   : > { %2013 = vst.msk [vmem:[#allocation2] sm:$0xf] %vm688_vm9, %v1966_v6  ;;  %2468 = vmatmul.msk.bf16.vlgmr.msra.gmra.mxu0 %vm773_vm10, %v2435_v7  ;;  %v378_v50 = vrot.slane %v376_v29, 5  ;;  %v382_v6 = vshll.u32 %v262_v60, 16  ;;  %v386_v7 = vshrl.u32 %v262_v60, 16  ;;  %v1258_v46 = vrot.slane %v2529_v23, 5 }
  0xae   : > { %2014 = vst.msk [vmem:[#allocation2 + $0x4] sm:$0xf] %vm688_vm9, %v3328_v10  ;;  %v375_v37 = vrot.slane %v373_v43, 4  ;;  %v1013_v31 = vsel %vm3056_vm5, %v1008_v12, %v3403_v21  ;;  %v1763_v4 = vshrl.u32 %v2634_v52, 16 }
  0xaf   : > { %654 = vrot.lane.b32.xlu0 %v611_v9, %s2931_s23  ;;  %520 = vst.msk [vmem:[#allocation2 + $0xc] sm:$0xf] %vm516_vm8, %v475_v8  ;;  %1150 = vrot.lane.b32.xlu2 %v1119_v17, %s2932_s24  ;;  %v2528_v8 = vld [vmem:[%s3036_s14 + $0x34] sm:$0xf]  ;;  %v1023_v9 = vsel %vm3056_vm5, %v1018_v58, %v1022_v59  ;;  %v2545_v17 = vrot.slane %v2527_v11, 9  ;;  %v388_v19 = vrot.slane %v386_v7, 4 }
  0xb0   : > { %1811 = vrot.lane.b32.xlu1 %v1700_v14, %s2932_s24  ;;  %v379_v5 = vor.u32 %v378_v50, %v375_v37  ;;  %v384_v14 = vrot.slane %v382_v6, 5  ;;  %v1255_v15 = vrot.slane %v2528_v8, 5  ;;  %v2601_v7 = vld [vmem:[%s3036_s14 + $0x24] sm:$0xf] }
  0xb1   : > { %v667_v10 = vpop.permute.xlu0 %666  ;;  %v497_v39 = vpop.permute.xlu2 %496 }
  0xb2   : > { %702 = vst.msk [vmem:[#allocation2 + $0x34] sm:$0xf] %vm688_vm9, %v667_v10  ;;  %v1123_v33 = vpop.permute.xlu1 %1122  ;;  %v380_v13 = vrot.slane %v379_v5, 4  ;;  %v263_v10 = vld [vmem:[%s3036_s14 + $0x38] sm:$0x1]  ;;  %v1256_v38 = vsel %vm3038_vm2, %v2545_v17, %v1255_v15  ;;  %v389_v40 = vor.u32 %v388_v19, %v384_v14  ;;  %v1257_v29 = vrot.slane %v1255_v15, 4 }
  0xb3   : > { %1169 = vst.msk [vmem:[#allocation2 + $0x44] sm:$0xf] %vm516_vm8, %v1123_v33  ;;  %v1750_v33 = vshrl.u32 %v2633_v18, 16  ;;  %v392_v41 = vshll.u32 %v263_v10, 16  ;;  %v2506_v17 = vld [vmem:[%s3036_s14 + $0x3c] sm:$0xf] }
  0xb4   : > { %531 = vst.msk [vmem:[#allocation2 + $0x38] sm:$0xf] %vm516_vm8, %v497_v39  ;;  %v1753_v39 = vshll.u32 %v2633_v18, 16  ;;  %v390_v55 = vrot.slane %v389_v40, 4  ;;  %v1259_v60 = vsel %vm3038_vm2, %v1257_v29, %v1258_v46  ;;  %v1765_v18 = vrot.slane %v1763_v4, 4 }
  0xb5   : > { %v2743_v45 = vld [vmem:[#allocation2] sm:$0xff]  ;;  %v394_v42 = vrot.slane %v392_v41, 5 }
  0xb6   : > { %2710 = vmatmul.msk.bf16.vlgmr.msra.gmra.mxu2 %vm773_vm10, %v2743_v45  ;;  %v2602_v45 = vld [vmem:[%s3036_s14 + $0x28] sm:$0xf]  ;;  %v1755_v53 = vrot.slane %v1753_v39, 5  ;;  %v2491_v39 = vld [vmem:[%s3036_s14 + $0x58] sm:$0xf] }
  0xb7   : > { %1809 = vrot.lane.b32.xlu0 %v1690_v34, %s2932_s24  ;;  %1316 = vrot.lane.b32.xlu2 %v1284_v48, %s2931_s23  ;;  %v2627_v34 = vld [vmem:[%s3036_s14 + $0x48] sm:$0xf]  ;;  %v1752_v48 = vrot.slane %v1750_v33, 4  ;;  %v395_v5 = vsel %vm3056_vm5, %v390_v55, %v394_v42  ;;  %v1025_v33 = vshrl.u32 %v2506_v17, 16  ;;  %v2507_v29 = vld [vmem:[%s3036_s14 + $0x40] sm:$0xf] }
  0xb8   : > { %1977 = vrot.lane.b32.xlu1 %v1933_v25, %s2931_s23  ;;  %v1702_v21 = vshrl.u32 %v2627_v34, 16  ;;  %v1705_v43 = vshll.u32 %v2627_v34, 16  ;;  %v1028_v34 = vshll.u32 %v2506_v17, 16  ;;  %901 = vst.msk [vmem:[#allocation2 + $0x74] sm:$0xf] %vm232_vm6, %v2491_v39  ;;  %v1034_v55 = vshll.u32 %v2507_v29, 16 }
  0xb9   : > { %v2731_v56 = vld [vmem:[#allocation2 + $0x30] sm:$0xf0]  ;;  %v1121_v57 = vpop.permute.xlu0 %1120  ;;  %v3430_v2 = vpop.permute.xlu2 %1803  ;;  %v2532_v17 = vld [vmem:[%s3036_s14 + $0x44] sm:$0x1] }
  0xba   : > { %1578 = vst.msk [vmem:[#allocation2 + $0x34] sm:$0xf] %vm232_vm6, %v2612_v49  ;;  %v2459_v61 = vor.u32 %v2731_v56, %v2458_v54  ;;  %v473_v1 = vpop.permute.xlu1 %472  ;;  %v2628_v54 = vld [vmem:[%s3036_s14 + $0x4c] sm:$0xf]  ;;  %v1704_v37 = vrot.slane %v1702_v21, 4  ;;  %v1707_v50 = vrot.slane %v1705_v43, 5 }
  0xbb   : > { %1168 = vst.msk [vmem:[#allocation2 + $0x40] sm:$0xf] %vm516_vm8, %v1121_v57  ;;  %v1715_v59 = vshrl.u32 %v2628_v54, 16  ;;  %v2490_v21 = vld [vmem:[%s3036_s14 + $0x54] sm:$0xf]  ;;  %v1030_v46 = vrot.slane %v1028_v34, 5 }
  0xbc   : > { %1336 = vst.msk [vmem:[#allocation2 + $0x40] sm:$0xf] %vm688_vm9, %v3358_v36  ;;  %2474 = vmatmul.msk.bf16.vlgmr.msra.gmra.mxu3 %vm773_vm10, %v2459_v61  ;;  %v1936_v36 = vsel %vm3038_vm2, %v1934_v62, %v1935_v63  ;;  %v1711_v61 = vshll.u32 %v2628_v54, 16  ;;  %v545_v62 = vld [vmem:[%s3036_s14 + $0x30] sm:$0xe]  ;;  %v1756_v63 = vor.u32 %v1755_v53, %v1752_v48  ;;  %v1708_v6 = vor.u32 %v1707_v50, %v1704_v37 }
  0xbd   : > { %519 = vst.msk [vmem:[#allocation2 + $0x8] sm:$0xf] %vm516_vm8, %v473_v1  ;;  %2756 = vmatpush.bf16.msra.mxu3 %v3292_v27  ;;  %v3449_v27 = vld [vmem:[%s3036_s14 + $0x34] sm:$0xf]  ;;  %v1759_v1 = vshll.u32 %v2634_v52, 16  ;;  %v2428_v8 = vrot.slane %v545_v62, 9 }
  0xbe   : > { %v614_v32 = vrot.slane %v3449_v27, 5  ;;  %v1757_v12 = vrot.slane %v1756_v63, 4  ;;  %v1939_v27 = vrot.slane %v3505_v20, 5  ;;  %900 = vst.msk [vmem:[#allocation2 + $0x70] sm:$0xf] %vm232_vm6, %v2490_v21  ;;  %v1036_v62 = vrot.slane %v1034_v55, 5 }
  0xbf   : > { %1318 = vrot.lane.b32.xlu0 %v1287_v3, %s2931_s23  ;;  %1979 = vrot.lane.b32.xlu2 %v1936_v36, %s2931_s23  ;;  %v2651_v37 = vld [vmem:[%s3036_s14 + $0x48] sm:$0xe]  ;;  %v2658_v63 = vld [vmem:[%s3036_s14 + $0x64] sm:$0xf] }
  0xc0   : > { %1134 = vrot.lane.b32.xlu1 %v1023_v9, %s2932_s24  ;;  %v616_v25 = vrot.slane %v614_v32, 4  ;;  %v1717_v9 = vrot.slane %v1715_v59, 4  ;;  %v615_v23 = vsel %vm3038_vm2, %v2428_v8, %v614_v32  ;;  %v2667_v59 = vrot.slane %v2651_v37, 9  ;;  %v2632_v37 = vld [vmem:[%s3036_s14 + $0x5c] sm:$0x1] }
  0xc1   : > { %v1291_v16 = vpop.permute.xlu0 %1290  ;;  %2757 = vmatpush.bf16.msra.mxu3 %v3305_v44  ;;  %v3457_v24 = vpop.permute.xlu2 %1969  ;;  %v385_v44 = vsel %vm3056_vm5, %v380_v13, %v384_v14  ;;  %v1761_v13 = vrot.slane %v1759_v1, 5  ;;  %v2629_v14 = vld [vmem:[%s3036_s14 + $0x50] sm:$0x1] }
  0xc2   : > { %1337 = vst.msk [vmem:[#allocation2 + $0x44] sm:$0xf] %vm688_vm9, %v1291_v16  ;;  %v647_v22 = vpop.permute.xlu1 %646  ;;  %v618_v3 = vsel %vm3038_vm2, %v616_v25, %v617_v47  ;;  %v1709_v16 = vrot.slane %v1708_v6, 4  ;;  %v1721_v30 = vshll.u32 %v2629_v14, 16  ;;  %v1941_v25 = vrot.slane %v1939_v27, 4 }
  0xc3   : > { %692 = vst.msk [vmem:[#allocation2 + $0xc] sm:$0xf] %vm688_vm9, %v647_v22  ;;  %v2635_v22 = vld [vmem:[%s3036_s14 + $0x68] sm:$0x1]  ;;  %v1766_v35 = vor.u32 %v1765_v18, %v1761_v13 }
  0xc4   : > { %v1723_v41 = vrot.slane %v1721_v30, 5  ;;  %v2659_v14 = vld [vmem:[%s3036_s14 + $0x68] sm:$0x1] }
  0xc5   : > { %v1767_v48 = vrot.slane %v1766_v35, 4 }
  0xc7   : > { %1132 = vrot.lane.b32.xlu0 %v1013_v31, %s2932_s24  ;;  %1300 = vrot.lane.b32.xlu2 %v1256_v38, %s2931_s23  ;;  %v1762_v31 = vsel %vm3056_vm5, %v1757_v12, %v1761_v13  ;;  %v1769_v38 = vshll.u32 %v2635_v22, 16  ;;  %v264_v12 = vld [vmem:[%s3036_s14 + $0x3c] sm:$0xf]  ;;  %v1940_v13 = vsel %vm3038_vm2, %v2667_v59, %v1939_v27  ;;  %v265_v22 = vld [vmem:[%s3036_s14 + $0x40] sm:$0xf] }
  0xc8   : > { %484 = vrot.lane.b32.xlu1 %v385_v44, %s2932_s24  ;;  %v221_v44 = vld [vmem:[%s3036_s14 + $0x1c] sm:$0xf]  ;;  %v406_v27 = vshll.u32 %v265_v22, 16 }
  0xc9   : > { %v645_v49 = vpop.permute.xlu0 %644  ;;  %v2734_v51 = vld [vmem:[#allocation2 + $0x40] sm:$0xff]  ;;  %v1127_v58 = vpop.permute.xlu2 %1126  ;;  %238 = vst.msk [vmem:[#allocation2 + $0x14] sm:$0xf] %vm232_vm6, %v221_v44 }
  0xca   : > { %691 = vst.msk [vmem:[#allocation2 + $0x8] sm:$0xf] %vm688_vm9, %v645_v49  ;;  %v2726_v56 = vld [vmem:[#allocation2 + $0x8] sm:$0xf0]  ;;  %v1802_v57 = vpop.permute.xlu1 %1801  ;;  %2589 = vmatmul.msk.bf16.vlgmr.msra.gmra.mxu1 %vm773_vm10, %v2734_v51  ;;  %v1771_v49 = vrot.slane %v1769_v38, 5 }
  0xcb   : > { %1568 = vst.msk [vmem:[#allocation2 + $0xc] sm:$0xf] %vm232_vm6, %v2602_v45  ;;  %v1027_v45 = vrot.slane %v1025_v33, 4  ;;  %v2614_v51 = vld [vmem:[%s3036_s14 + $0x70] sm:$0xf]  ;;  %v1265_v33 = vrot.slane %v2532_v17, 5 }
  0xcc   : > { %1848 = vst.msk [vmem:[#allocation2 + $0xc] sm:$0xf] %vm516_vm8, %v3430_v2  ;;  %v1713_v2 = vrot.slane %v1711_v61, 5  ;;  %v2657_v61 = vld [vmem:[%s3036_s14 + $0x60] sm:$0xe] }
  0xcd   : > { %1171 = vst.msk [vmem:[#allocation2 + $0x4c] sm:$0xf] %vm516_vm8, %v1127_v58  ;;  %v1031_v50 = vor.u32 %v1030_v46, %v1027_v45  ;;  %v1772_v58 = vsel %vm3056_vm5, %v1767_v48, %v1771_v49  ;;  %v2669_v8 = vrot.slane %v2657_v61, 9  ;;  %v2631_v38 = vld [vmem:[%s3036_s14 + $0x58] sm:$0xf] }
  0xce   : > { %v1718_v28 = vor.u32 %v1717_v9, %v1713_v2  ;;  %v1714_v32 = vsel %vm3056_vm5, %v1709_v16, %v1713_v2  ;;  %v2482_v2 = vld [vmem:[%s3036_s14 + $0x24] sm:$0xf]  ;;  %v1735_v45 = vshll.u32 %v2631_v38, 16  ;;  %v1739_v46 = vshrl.u32 %v2631_v38, 16  ;;  %v548_v48 = vld [vmem:[%s3036_s14 + $0x3c] sm:$0xe] }
  0xcf   : > { %1302 = vrot.lane.b32.xlu0 %v1259_v60, %s2931_s23  ;;  %486 = vrot.lane.b32.xlu2 %v395_v5, %s2932_s24  ;;  %v2613_v60 = vld [vmem:[%s3036_s14 + $0x6c] sm:$0xf]  ;;  %v1032_v4 = vrot.slane %v1031_v50, 4  ;;  %v3556_v5 = vld [vmem:[%s3036_s14 + $0x40] sm:$0xf] }
  0xd0   : > { %658 = vrot.lane.b32.xlu1 %v618_v3, %s2931_s23  ;;  %v1719_v40 = vrot.slane %v1718_v28, 4  ;;  %v1262_v18 = vrot.slane %v3556_v5, 5  ;;  %892 = vst.msk [vmem:[#allocation2 + $0x50] sm:$0xf] %vm232_vm6, %v2482_v2  ;;  %v400_v28 = vshll.u32 %v264_v12, 16 }
  0xd1   : > { %v2438_v36 = vld [vmem:[#allocation2 + $0x8] sm:$0xf]  ;;  %v499_v11 = vpop.permute.xlu0 %498  ;;  %v477_v10 = vpop.permute.xlu2 %476  ;;  %v1037_v16 = vsel %vm3056_vm5, %v1032_v4, %v1036_v62  ;;  %v549_v49 = vld [vmem:[%s3036_s14 + $0x40] sm:$0xf]  ;;  %v2630_v50 = vld [vmem:[%s3036_s14 + $0x54] sm:$0xf] }
  0xd2   : > { %1567 = vst.msk [vmem:[#allocation2 + $0x8] sm:$0xf] %vm232_vm6, %v2601_v7  ;;  %v2439_v15 = vor.u32 %v2726_v56, %v2438_v36  ;;  %v671_v19 = vpop.permute.xlu1 %670  ;;  %v1724_v54 = vsel %vm3056_vm5, %v1719_v40, %v1723_v41  ;;  %v1038_v56 = vshrl.u32 %v2507_v29, 16  ;;  %v1264_v44 = vrot.slane %v1262_v18, 4  ;;  %v2603_v61 = vld [vmem:[%s3036_s14 + $0x30] sm:$0xf] }
  0xd3   : > { %1847 = vst.msk [vmem:[#allocation2 + $0x8] sm:$0xf] %vm516_vm8, %v1802_v57  ;;  %v402_v41 = vrot.slane %v400_v28, 5  ;;  %v1745_v4 = vshll.u32 %v2632_v37, 16  ;;  %v2604_v17 = vld [vmem:[%s3036_s14 + $0x34] sm:$0xf] }
  0xd4   : > { %532 = vst.msk [vmem:[#allocation2 + $0x3c] sm:$0xf] %vm516_vm8, %v499_v11  ;;  %2469 = vmatmul.msk.bf16.gmra.mxu0 %vm773_vm10, %v2439_v15  ;;  %v1040_v6 = vrot.slane %v1038_v56, 4  ;;  %v2508_v11 = vld [vmem:[%s3036_s14 + $0x44] sm:$0x1]  ;;  %v1953_v15 = vrot.slane %v2658_v63, 5 }
  0xd5   : > { %2015 = vst.msk [vmem:[#allocation2 + $0x8] sm:$0xf] %vm688_vm9, %v3457_v24  ;;  %v2653_v24 = vld [vmem:[%s3036_s14 + $0x50] sm:$0x1]  ;;  %v1044_v20 = vshll.u32 %v2508_v11, 16  ;;  %v2429_v63 = vrot.slane %v548_v48, 9 }
  0xd6   : > { %704 = vst.msk [vmem:[#allocation2 + $0x3c] sm:$0xf] %vm688_vm9, %v671_v19  ;;  %v1942_v47 = vrot.slane %v2653_v24, 5  ;;  %v1041_v19 = vor.u32 %v1040_v6, %v1036_v62  ;;  %v1955_v30 = vrot.slane %v1953_v15, 4  ;;  %v2483_v56 = vld [vmem:[%s3036_s14 + $0x28] sm:$0xf] }
  0xd7   : > { %656 = vrot.lane.b32.xlu0 %v615_v23, %s2931_s23  ;;  %521 = vst.msk [vmem:[#allocation2 + $0x10] sm:$0xf] %vm516_vm8, %v477_v10  ;;  %1813 = vrot.lane.b32.xlu2 %v1714_v32, %s2932_s24  ;;  %v1954_v10 = vsel %vm3038_vm2, %v2669_v8, %v1953_v15  ;;  %v397_v23 = vshrl.u32 %v264_v12, 16  ;;  %v410_v32 = vshrl.u32 %v265_v22, 16  ;;  %v1046_v24 = vrot.slane %v1044_v20, 5 }
  0xd8   : > { %1821 = vrot.lane.b32.xlu1 %v1762_v31, %s2932_s24  ;;  %v1943_v57 = vsel %vm3038_vm2, %v1941_v25, %v1942_v47  ;;  %v1956_v31 = vrot.slane %v2659_v14, 5  ;;  %v1042_v35 = vrot.slane %v1041_v19, 4  ;;  %v1266_v25 = vsel %vm3038_vm2, %v1264_v44, %v1265_v33  ;;  %v2530_v47 = vld [vmem:[%s3036_s14 + $0x3c] sm:$0xe]  ;;  %893 = vst.msk [vmem:[#allocation2 + $0x54] sm:$0xf] %vm232_vm6, %v2483_v56 }
  0xd9   : > { %v669_v43 = vpop.permute.xlu0 %668  ;;  %v3537_v53 = vpop.permute.xlu2 %650  ;;  %v399_v40 = vrot.slane %v397_v23, 4  ;;  %v1726_v6 = vshrl.u32 %v2630_v50, 16  ;;  %v2636_v12 = vld [vmem:[%s3036_s14 + $0x6c] sm:$0xf]  ;;  %v1729_v15 = vshll.u32 %v2630_v50, 16  ;;  %v1747_v20 = vrot.slane %v1745_v4, 5 }
  0xda   : > { %703 = vst.msk [vmem:[#allocation2 + $0x38] sm:$0xf] %vm688_vm9, %v669_v43  ;;  %v1125_v52 = vpop.permute.xlu1 %1124  ;;  %v1957_v29 = vsel %vm3038_vm2, %v1955_v30, %v1956_v31  ;;  %v1047_v55 = vsel %vm3056_vm5, %v1042_v35, %v1046_v24  ;;  %v223_v19 = vld [vmem:[%s3036_s14 + $0x28] sm:$0xf]  ;;  %v2637_v31 = vld [vmem:[%s3036_s14 + $0x70] sm:$0xf] }
  0xdb   : > { %1170 = vst.msk [vmem:[#allocation2 + $0x48] sm:$0xf] %vm516_vm8, %v1125_v52  ;;  %v408_v52 = vrot.slane %v406_v27, 5  ;;  %v1728_v23 = vrot.slane %v1726_v6, 4  ;;  %v1731_v30 = vrot.slane %v1729_v15, 5 }
  0xdc   : > { %240 = vst.msk [vmem:[#allocation2 + $0x1c] sm:$0xf] %vm232_vm6, %v223_v19  ;;  %v222_v38 = vld [vmem:[%s3036_s14 + $0x24] sm:$0xf]  ;;  %v2638_v37 = vld [vmem:[%s3036_s14 + $0x74] sm:$0x1] }
  0xdd   : > { %v2732_v42 = vld [vmem:[#allocation2 + $0x38] sm:$0xf0]  ;;  %239 = vst.msk [vmem:[#allocation2 + $0x18] sm:$0xf] %vm232_vm6, %v222_v38 }
  0xde   : > { %1580 = vst.msk [vmem:[#allocation2 + $0x3c] sm:$0xf] %vm232_vm6, %v2614_v51  ;;  %v266_v51 = vld [vmem:[%s3036_s14 + $0x44] sm:$0x1] }
  0xdf   : > { %1815 = vrot.lane.b32.xlu0 %v1724_v54, %s2932_s24  ;;  %1823 = vrot.lane.b32.xlu2 %v1772_v58, %s2932_s24  ;;  %v412_v54 = vrot.slane %v410_v32, 4  ;;  %v3603_v58 = vrot.slane %v1735_v45, 5  ;;  %v1787_v45 = vshrl.u32 %v2637_v31, 16 }
  0xe0   : > { %1983 = vrot.lane.b32.xlu1 %v1943_v57, %s2931_s23  ;;  %v2546_v57 = vrot.slane %v2530_v47, 9 }
  0xe1   : > { %v2462_v1 = vld [vmem:[#allocation2 + $0x38] sm:$0xf]  ;;  %v1972_v3 = vpop.permute.xlu0 %1971  ;;  %v3561_v36 = vpop.permute.xlu2 %1805 }
  0xe2   : > { %1579 = vst.msk [vmem:[#allocation2 + $0x38] sm:$0xf] %vm232_vm6, %v2613_v60  ;;  %v2463_v7 = vor.u32 %v2732_v42, %v2462_v1  ;;  %v1295_v9 = vpop.permute.xlu1 %1294  ;;  %v403_v42 = vor.u32 %v402_v41, %v399_v40  ;;  %v1741_v60 = vrot.slane %v1739_v46, 4  ;;  %v621_v1 = vrot.slane %v549_v49, 5  ;;  %v2493_v41 = vld [vmem:[%s3036_s14 + $0x64] sm:$0xf] }
  0xe3   : > { %2016 = vst.msk [vmem:[#allocation2 + $0xc] sm:$0xf] %vm688_vm9, %v1972_v3  ;;  %v416_v3 = vshll.u32 %v266_v51, 16  ;;  %v2492_v46 = vld [vmem:[%s3036_s14 + $0x60] sm:$0xf] }
  0xe4   : > { %1339 = vst.msk [vmem:[#allocation2 + $0x4c] sm:$0xf] %vm688_vm9, %v1295_v9  ;;  %2475 = vmatmul.msk.bf16.gmra.mxu3 %vm773_vm10, %v2463_v7  ;;  %v404_v7 = vrot.slane %v403_v42, 4  ;;  %v413_v9 = vor.u32 %v412_v54, %v408_v52  ;;  %v1742_v14 = vor.u32 %v1741_v60, %v3603_v58  ;;  %v2654_v49 = vld [vmem:[%s3036_s14 + $0x54] sm:$0xe] }
  0xe5   : > { %903 = vst.msk [vmem:[#allocation2 + $0x7c] sm:$0xf] %vm232_vm6, %v2493_v41  ;;  %v2655_v51 = vld [vmem:[%s3036_s14 + $0x58] sm:$0xf]  ;;  %v2668_v50 = vrot.slane %v2654_v49, 9 }
  0xe6   : > { %v409_v5 = vsel %vm3056_vm5, %v404_v7, %v408_v52  ;;  %v414_v22 = vrot.slane %v413_v9, 4  ;;  %v1743_v28 = vrot.slane %v1742_v14, 4  ;;  %902 = vst.msk [vmem:[#allocation2 + $0x78] sm:$0xf] %vm232_vm6, %v2492_v46  ;;  %v1946_v56 = vrot.slane %v2655_v51, 5 }
  0xe7   : > { %1981 = vrot.lane.b32.xlu0 %v1940_v13, %s2931_s23  ;;  %1989 = vrot.lane.b32.xlu2 %v1954_v10, %s2931_s23  ;;  %v1263_v13 = vsel %vm3038_vm2, %v2546_v57, %v1262_v18  ;;  %v1774_v10 = vshrl.u32 %v2636_v12, 16  ;;  %v1777_v18 = vshll.u32 %v2636_v12, 16  ;;  %v2509_v12 = vld [vmem:[%s3036_s14 + $0x48] sm:$0xf] }
  0xe8   : > { %1136 = vrot.lane.b32.xlu1 %v1037_v16, %s2932_s24  ;;  %v622_v16 = vsel %vm3038_vm2, %v2429_v63, %v621_v1  ;;  %v1947_v4 = vsel %vm3038_vm2, %v2668_v50, %v1946_v56  ;;  %v1049_v14 = vshrl.u32 %v2509_v12, 16  ;;  %v1052_v15 = vshll.u32 %v2509_v12, 16 }
  0xe9   : > { %v1293_v34 = vpop.permute.xlu0 %1292  ;;  %v1315_v43 = vpop.permute.xlu2 %1314  ;;  %v1776_v27 = vrot.slane %v1774_v10, 4  ;;  %v1779_v32 = vrot.slane %v1777_v18, 5 }
  0xea   : > { %1338 = vst.msk [vmem:[#allocation2 + $0x48] sm:$0xf] %vm688_vm9, %v1293_v34  ;;  %v2744_v39 = vld [vmem:[#allocation2 + $0x8] sm:$0xff]  ;;  %v649_v21 = vpop.permute.xlu1 %648  ;;  %v623_v34 = vrot.slane %v621_v1, 4  ;;  %v1051_v18 = vrot.slane %v1049_v14, 4 }
  0xeb   : > { %693 = vst.msk [vmem:[#allocation2 + $0x10] sm:$0xf] %vm688_vm9, %v649_v21  ;;  %2711 = vmatmul.msk.bf16.gmra.mxu2 %vm773_vm10, %v2744_v39  ;;  %v1780_v48 = vor.u32 %v1779_v32, %v1776_v27  ;;  %v2611_v14 = vld [vmem:[%s3036_s14 + $0x60] sm:$0xf] }
  0xec   : > { %1577 = vst.msk [vmem:[#allocation2 + $0x30] sm:$0xf] %vm232_vm6, %v2611_v14 }
  0xed   : > { %v1781_v57 = vrot.slane %v1780_v48, 4 }
  0xef   : > { %1991 = vrot.lane.b32.xlu0 %v1957_v29, %s2931_s23  ;;  %1138 = vrot.lane.b32.xlu2 %v1047_v55, %s2932_s24  ;;  %v1783_v29 = vshll.u32 %v2637_v31, 16  ;;  %v1789_v55 = vrot.slane %v1787_v45, 4  ;;  %v2533_v31 = vld [vmem:[%s3036_s14 + $0x48] sm:$0xe] }
  0xf0   : > { %1306 = vrot.lane.b32.xlu1 %v1266_v25, %s2931_s23  ;;  %v1748_v25 = vsel %vm3056_vm5, %v1743_v28, %v1747_v20  ;;  %v2660_v28 = vld [vmem:[%s3036_s14 + $0x6c] sm:$0xe]  ;;  %v2547_v41 = vrot.slane %v2533_v31, 9 }
  0xf1   : > { %v479_v59 = vpop.permute.xlu0 %478  ;;  %v2735_v62 = vld [vmem:[#allocation2 + $0x48] sm:$0xff]  ;;  %v1129_v11 = vpop.permute.xlu2 %1128  ;;  %v1785_v54 = vrot.slane %v1783_v29, 5  ;;  %v2670_v27 = vrot.slane %v2660_v28, 9  ;;  %v2485_v29 = vld [vmem:[%s3036_s14 + $0x34] sm:$0xf] }
  0xf2   : > { %522 = vst.msk [vmem:[#allocation2 + $0x14] sm:$0xf] %vm516_vm8, %v479_v59  ;;  %v2442_v8 = vld [vmem:[#allocation2 + $0x10] sm:$0xf]  ;;  %v1147_v2 = vpop.permute.xlu1 %1146  ;;  %2590 = vmatmul.msk.bf16.gmra.mxu1 %vm773_vm10, %v2735_v62  ;;  %v2608_v31 = vld [vmem:[%s3036_s14 + $0x4c] sm:$0xf] }
  0xf3   : > { %694 = vst.msk [vmem:[#allocation2 + $0x14] sm:$0xf] %vm688_vm9, %v3537_v53  ;;  %v550_v53 = vld [vmem:[%s3036_s14 + $0x44] sm:$0x1]  ;;  %v2661_v62 = vld [vmem:[%s3036_s14 + $0x70] sm:$0xf]  ;;  %v1790_v1 = vor.u32 %v1789_v55, %v1785_v54  ;;  %v1786_v7 = vsel %vm3056_vm5, %v1781_v57, %v1785_v54 }
  0xf4   : > { %1569 = vst.msk [vmem:[#allocation2 + $0x10] sm:$0xf] %vm232_vm6, %v2603_v61  ;;  %v624_v44 = vrot.slane %v550_v53, 5  ;;  %v1960_v6 = vrot.slane %v2661_v62, 5 }
  0xf5   : > { %1849 = vst.msk [vmem:[#allocation2 + $0x10] sm:$0xf] %vm516_vm8, %v3561_v36  ;;  %v418_v36 = vrot.slane %v416_v3, 5  ;;  %v1793_v3 = vshll.u32 %v2638_v37, 16  ;;  %v1791_v9 = vrot.slane %v1790_v1, 4 }
  0xf6   : > { %1181 = vst.msk [vmem:[#allocation2 + $0x74] sm:$0xf] %vm516_vm8, %v1147_v2  ;;  %v625_v47 = vsel %vm3038_vm2, %v623_v34, %v624_v44  ;;  %v2656_v2 = vld [vmem:[%s3036_s14 + $0x5c] sm:$0x1]  ;;  %v1962_v53 = vrot.slane %v1960_v6, 4 }
  0xf7   : > { %1304 = vrot.lane.b32.xlu0 %v1263_v13, %s2931_s23  ;;  %1349 = vst.msk [vmem:[#allocation2 + $0x74] sm:$0xf] %vm688_vm9, %v1315_v43  ;;  %488 = vrot.lane.b32.xlu2 %v409_v5, %s2932_s24  ;;  %v419_v21 = vsel %vm3056_vm5, %v414_v22, %v418_v36  ;;  %v1732_v43 = vor.u32 %v1731_v30, %v1728_v23  ;;  %v2510_v13 = vld [vmem:[%s3036_s14 + $0x4c] sm:$0xf]  ;;  %v1949_v5 = vrot.slane %v2656_v2, 5  ;;  %v1054_v22 = vrot.slane %v1052_v15, 5 }
  0xf8   : > { %1172 = vst.msk [vmem:[#allocation2 + $0x50] sm:$0xf] %vm516_vm8, %v1129_v11  ;;  %660 = vrot.lane.b32.xlu1 %v622_v16, %s2931_s23  ;;  %v1795_v11 = vrot.slane %v1793_v3, 5  ;;  %v1058_v20 = vshll.u32 %v2510_v13, 16  ;;  %v1062_v23 = vshrl.u32 %v2510_v13, 16 }
  0xf9   : > { %v1145_v33 = vpop.permute.xlu0 %1144  ;;  %v3640_v40 = vpop.permute.xlu2 %1298  ;;  %v1733_v52 = vrot.slane %v1732_v43, 4  ;;  %v1055_v34 = vor.u32 %v1054_v22, %v1051_v18  ;;  %v2534_v44 = vld [vmem:[%s3036_s14 + $0x4c] sm:$0xf]  ;;  %895 = vst.msk [vmem:[#allocation2 + $0x5c] sm:$0xf] %vm232_vm6, %v2485_v29 }
  0xfa   : > { %1180 = vst.msk [vmem:[#allocation2 + $0x70] sm:$0xf] %vm516_vm8, %v1145_v33  ;;  %v2727_v35 = vld [vmem:[#allocation2 + $0x10] sm:$0xf0]  ;;  %v1313_v39 = vpop.permute.xlu1 %1312  ;;  %v1796_v36 = vsel %vm3056_vm5, %v1791_v9, %v1795_v11  ;;  %v1060_v32 = vrot.slane %v1058_v20, 5 }
  0xfb   : > { %v2443_v24 = vor.u32 %v2727_v35, %v2442_v8  ;;  %1570 = vst.msk [vmem:[#allocation2 + $0x14] sm:$0xf] %vm232_vm6, %v2604_v17  ;;  %v1738_v63 = vsel %vm3056_vm5, %v1733_v52, %v3603_v58  ;;  %v2662_v8 = vld [vmem:[%s3036_s14 + $0x74] sm:$0x1]  ;;  %v1948_v17 = vrot.slane %v1946_v56, 4  ;;  %v1064_v35 = vrot.slane %v1062_v23, 4 }
  0xfc   : > { %1348 = vst.msk [vmem:[#allocation2 + $0x70] sm:$0xf] %vm688_vm9, %v1313_v39  ;;  %v1963_v16 = vrot.slane %v2662_v8, 5  ;;  %v1056_v43 = vrot.slane %v1055_v34, 4  ;;  %v2484_v52 = vld [vmem:[%s3036_s14 + $0x30] sm:$0xf] }
  0xfd   : > { %2470 = vmatmul.msk.bf16.gmra.mxu0 %vm773_vm10, %v2443_v24  ;;  %v1950_v33 = vsel %vm3038_vm2, %v1948_v17, %v1949_v5  ;;  %v2511_v24 = vld [vmem:[%s3036_s14 + $0x50] sm:$0x1]  ;;  %894 = vst.msk [vmem:[#allocation2 + $0x58] sm:$0xf] %vm232_vm6, %v2484_v52  ;;  %v226_v22 = vld [vmem:[%s3036_s14 + $0x3c] sm:$0xf] }
  0xfe   : > { %v1964_v30 = vsel %vm3038_vm2, %v1962_v53, %v1963_v16  ;;  %v1068_v48 = vshll.u32 %v2511_v24, 16  ;;  %v1061_v51 = vsel %vm3056_vm5, %v1056_v43, %v1060_v32  ;;  %243 = vst.msk [vmem:[#allocation2 + $0x28] sm:$0xf] %vm232_vm6, %v226_v22  ;;  %v3767_v34 = vld [vmem:[%s3930_s2] ss:$0 sm:$0xff] }
  0xff   : > { %490 = vrot.lane.b32.xlu0 %v419_v21, %s2932_s24  ;;  %662 = vrot.lane.b32.xlu2 %v625_v47, %s2931_s23  ;;  %v1269_v21 = vrot.slane %v2534_v44, 5  ;;  %v1065_v47 = vor.u32 %v1064_v35, %v1060_v32  ;;  %v2607_v43 = vld [vmem:[%s3036_s14 + $0x48] sm:$0xf] }
 0x100   : > { %1819 = vrot.lane.b32.xlu1 %v1748_v25, %s2932_s24  ;;  %v1961_v25 = vsel %vm3038_vm2, %v2670_v27, %v1960_v6  ;;  %v1070_v55 = vrot.slane %v1068_v48, 5 }
 0x101   : > { %v1808_v42 = vpop.permute.xlu0 %1807  ;;  %v3662_v59 = vpop.permute.xlu2 %652  ;;  %v1270_v49 = vsel %vm3038_vm2, %v2547_v41, %v1269_v21  ;;  %v1066_v54 = vrot.slane %v1065_v47, 4  ;;  %v1271_v50 = vrot.slane %v1269_v21, 4 }
 0x102   : > { %1850 = vst.msk [vmem:[#allocation2 + $0x14] sm:$0xf] %vm516_vm8, %v1808_v42  ;;  %v1976_v60 = vpop.permute.xlu1 %1975 }
 0x103   : > { %v2740_v61 = vld [vmem:[#allocation2 + $0x70] sm:$0xff]  ;;  %2018 = vst.msk [vmem:[#allocation2 + $0x14] sm:$0xf] %vm688_vm9, %v1976_v60  ;;  %v1071_v62 = vsel %vm3056_vm5, %v1066_v54, %v1070_v55 }
 0x104   : > { %2595 = vmatmul.msk.bf16.vlgmr.msrb.gmra.mxu3 %vm773_vm10, %v2740_v61  ;;  %v225_v61 = vld [vmem:[%s3036_s14 + $0x34] sm:$0xf] }
 0x105   : > { %242 = vst.msk [vmem:[#allocation2 + $0x24] sm:$0xf] %vm232_vm6, %v225_v61 }
 0x107   : > { %1817 = vrot.lane.b32.xlu0 %v1738_v63, %s2932_s24  ;;  %1825 = vrot.lane.b32.xlu2 %v1786_v7, %s2932_s24  ;;  %v224_v63 = vld [vmem:[%s3036_s14 + $0x30] sm:$0xf]  ;;  %v2606_v7 = vld [vmem:[%s3036_s14 + $0x40] sm:$0xf] }
 0x108   : > { %1985 = vrot.lane.b32.xlu1 %v1947_v4, %s2931_s23  ;;  %241 = vst.msk [vmem:[#allocation2 + $0x20] sm:$0xf] %vm232_vm6, %v224_v63 }
 0x109   : > { %v1974_v58 = vpop.permute.xlu0 %1973  ;;  %v1151_v10 = vpop.permute.xlu2 %1150 }
 0x10a   : > { %2017 = vst.msk [vmem:[#allocation2 + $0x10] sm:$0xf] %vm688_vm9, %v1974_v58  ;;  %v1297_v19 = vpop.permute.xlu1 %1296 }
 0x10b   : > { %1340 = vst.msk [vmem:[#allocation2 + $0x50] sm:$0xf] %vm688_vm9, %v1297_v19  ;;  %v2487_v19 = vld [vmem:[%s3036_s14 + $0x40] sm:$0xf] }
 0x10c   : > { %1183 = vst.msk [vmem:[#allocation2 + $0x7c] sm:$0xf] %vm516_vm8, %v1151_v10  ;;  %v2486_v10 = vld [vmem:[%s3036_s14 + $0x3c] sm:$0xf] }
 0x10d   : > { %897 = vst.msk [vmem:[#allocation2 + $0x64] sm:$0xf] %vm232_vm6, %v2487_v19 }
 0x10e   : > { %896 = vst.msk [vmem:[#allocation2 + $0x60] sm:$0xf] %vm232_vm6, %v2486_v10 }
 0x10f   : > { %1827 = vrot.lane.b32.xlu0 %v1796_v36, %s2932_s24  ;;  %1987 = vrot.lane.b32.xlu2 %v1950_v33, %s2931_s23 }
 0x110   : > { %1995 = vrot.lane.b32.xlu1 %v1964_v30, %s2931_s23 }
 0x111   : > { %v1131_v38 = vpop.permute.xlu0 %1130  ;;  %v2745_v39 = vld [vmem:[#allocation2 + $0x10] sm:$0xff]  ;;  %v1317_v46 = vpop.permute.xlu2 %1316 }
 0x112   : > { %1173 = vst.msk [vmem:[#allocation2 + $0x54] sm:$0xf] %vm516_vm8, %v1131_v38  ;;  %v483_v45 = vpop.permute.xlu1 %482  ;;  %2712 = vmatmul.msk.bf16.gmra.mxu2 %vm773_vm10, %v2745_v39  ;;  %v3774_v38 = vld [vmem:[%s3931_s3] ss:$0 sm:$0xff] }
 0x113   : > { %1341 = vst.msk [vmem:[#allocation2 + $0x54] sm:$0xf] %vm688_vm9, %v3640_v40  ;;  %v2535_v40 = vld [vmem:[%s3036_s14 + $0x50] sm:$0x1] }
 0x114   : > { %524 = vst.msk [vmem:[#allocation2 + $0x1c] sm:$0xf] %vm516_vm8, %v483_v45  ;;  %v1272_v56 = vrot.slane %v2535_v40, 5 }
 0x116   : > { %v1273_v1 = vsel %vm3038_vm2, %v1271_v50, %v1272_v56 }
 0x117   : > { %1993 = vrot.lane.b32.xlu0 %v1961_v25, %s2931_s23  ;;  %1140 = vrot.lane.b32.xlu2 %v1061_v51, %s2932_s24 }
 0x118   : > { %1308 = vrot.lane.b32.xlu1 %v1270_v49, %s2931_s23 }
 0x119   : > { %v481_v42 = vpop.permute.xlu0 %480  ;;  %v1980_v60 = vpop.permute.xlu2 %1979 }
 0x11a   : > { %523 = vst.msk [vmem:[#allocation2 + $0x18] sm:$0xf] %vm516_vm8, %v481_v42  ;;  %v2736_v37 = vld [vmem:[#allocation2 + $0x50] sm:$0xff]  ;;  %v1149_v57 = vpop.permute.xlu1 %1148  ;;  %v227_v42 = vld [vmem:[%s3036_s14 + $0x40] sm:$0xf] }
 0x11b   : > { %695 = vst.msk [vmem:[#allocation2 + $0x18] sm:$0xf] %vm688_vm9, %v3662_v59  ;;  %2591 = vmatmul.msk.bf16.gmra.mxu1 %vm773_vm10, %v2736_v37  ;;  %v2605_v59 = vld [vmem:[%s3036_s14 + $0x3c] sm:$0xf] }
 0x11c   : > { %1182 = vst.msk [vmem:[#allocation2 + $0x78] sm:$0xf] %vm516_vm8, %v1149_v57 }
 0x11d   : > { %1350 = vst.msk [vmem:[#allocation2 + $0x78] sm:$0xf] %vm688_vm9, %v1317_v46 }
 0x11e   : > { %244 = vst.msk [vmem:[#allocation2 + $0x2c] sm:$0xf] %vm232_vm6, %v227_v42 }
 0x11f   : > { %1142 = vrot.lane.b32.xlu0 %v1071_v62, %s2932_s24  ;;  %1310 = vrot.lane.b32.xlu2 %v1273_v1, %s2931_s23  ;;  %s2325_s23 = sshll.u32 %s3787_s11, 4  ;;  %s2326_s23 = int_to_ptr.vmem [resolvable:$true] %s2325_s23 }
 0x121   : > { %v655_v3 = vpop.permute.xlu0 %654  ;;  %v1301_v6 = vpop.permute.xlu2 %1300 }
 0x122   : > { %696 = vst.msk [vmem:[#allocation2 + $0x1c] sm:$0xf] %vm688_vm9, %v655_v3  ;;  %v2446_v26 = vld [vmem:[#allocation2 + $0x18] sm:$0xf]  ;;  %v1812_v4 = vpop.permute.xlu1 %1811 }
 0x123   : > { %1571 = vst.msk [vmem:[#allocation2 + $0x18] sm:$0xf] %vm232_vm6, %v2605_v59 }
 0x129   : > { %v2728_v0 = vld [vmem:[#allocation2 + $0x18] sm:$0xf0]  ;;  %v1810_v8 = vpop.permute.xlu0 %1809  ;;  %v487_v11 = vpop.permute.xlu2 %486 }
 0x12a   : > { %1572 = vst.msk [vmem:[#allocation2 + $0x1c] sm:$0xf] %vm232_vm6, %v2606_v7  ;;  %v2447_v2 = vor.u32 %v2728_v0, %v2446_v26  ;;  %v1978_v9 = vpop.permute.xlu1 %1977  ;;  %v811_v23 = vpop.f32.mrf.mxu0  ;;  %v2488_v26 = vld [vmem:[%s3036_s14 + $0x48] sm:$0xf] }
 0x12b   : > { %1852 = vst.msk [vmem:[#allocation2 + $0x1c] sm:$0xf] %vm516_vm8, %v1812_v4  ;;  %v2489_v4 = vld [vmem:[%s3036_s14 + $0x4c] sm:$0xf] }
 0x12c   : > { %1851 = vst.msk [vmem:[#allocation2 + $0x18] sm:$0xf] %vm516_vm8, %v1810_v8  ;;  %2471 = vmatmul.msk.bf16.gmra.mxu0 %vm773_vm10, %v2447_v2 }
 0x12d   : > { %2020 = vst.msk [vmem:[#allocation2 + $0x1c] sm:$0xf] %vm688_vm9, %v1980_v60 }
 0x12e   : > { %2019 = vst.msk [vmem:[#allocation2 + $0x18] sm:$0xf] %vm688_vm9, %v1978_v9  ;;  %v2609_v9 = vld [vmem:[%s3036_s14 + $0x54] sm:$0xf] }
 0x12f   : > { %526 = vst.msk [vmem:[#allocation2 + $0x24] sm:$0xf] %vm516_vm8, %v487_v11 }
 0x130   : > { %898 = vst.msk [vmem:[#allocation2 + $0x68] sm:$0xf] %vm232_vm6, %v2488_v26 }
 0x131   : > { %v1319_v12 = vpop.permute.xlu0 %1318  ;;  %v3744_v13 = vpop.permute.xlu2 %1813  ;;  %899 = vst.msk [vmem:[#allocation2 + $0x6c] sm:$0xf] %vm232_vm6, %v2489_v4 }
 0x132   : > { %1351 = vst.msk [vmem:[#allocation2 + $0x7c] sm:$0xf] %vm688_vm9, %v1319_v12  ;;  %v1135_v58 = vpop.permute.xlu1 %1134  ;;  %v813_v29 = vpop.f32.mrf.mxu0 }
 0x133   : > { %1175 = vst.msk [vmem:[#allocation2 + $0x5c] sm:$0xf] %vm516_vm8, %v1135_v58 }
 0x135   : > { %v2746_v15 = vld [vmem:[#allocation2 + $0x18] sm:$0xff] }
 0x136   : > { %2713 = vmatmul.msk.bf16.gmra.mxu2 %vm773_vm10, %v2746_v15 }
 0x139   : > { %v1133_v53 = vpop.permute.xlu0 %1132  ;;  %v2741_v16 = vld [vmem:[#allocation2 + $0x78] sm:$0xff]  ;;  %v1824_v5 = vpop.permute.xlu2 %1823 }
 0x13a   : > { %1174 = vst.msk [vmem:[#allocation2 + $0x58] sm:$0xf] %vm516_vm8, %v1133_v53  ;;  %v485_v17 = vpop.permute.xlu1 %484  ;;  %2596 = vmatmul.msk.bf16.gmra.mxu3 %vm773_vm10, %v2741_v16  ;;  %v2134_v28 = vpop.f32.mrf.mxu2 }
 0x13b   : > { %1342 = vst.msk [vmem:[#allocation2 + $0x58] sm:$0xf] %vm688_vm9, %v1301_v6 }
 0x13c   : > { %525 = vst.msk [vmem:[#allocation2 + $0x20] sm:$0xf] %vm516_vm8, %v485_v17 }
 0x13d   : > { %1858 = vst.msk [vmem:[#allocation2 + $0x34] sm:$0xf] %vm516_vm8, %v1824_v5 }
 0x141   : > { %v1303_v18 = vpop.permute.xlu0 %1302  ;;  %v1990_v20 = vpop.permute.xlu2 %1989 }
 0x142   : > { %1343 = vst.msk [vmem:[#allocation2 + $0x5c] sm:$0xf] %vm688_vm9, %v1303_v18  ;;  %v659_v36 = vpop.permute.xlu1 %658  ;;  %v2136_v49 = vpop.f32.mrf.mxu2  ;;  %v2610_v18 = vld [vmem:[%s3036_s14 + $0x58] sm:$0xf]  ;;  %s2719_s14 = sshll.u32 %s2913_s18, 4 }
 0x143   : > { %698 = vst.msk [vmem:[#allocation2 + $0x24] sm:$0xf] %vm688_vm9, %v659_v36  ;;  %s2322_s13 = sadd.s32 %s2720_s12, %s2719_s14 }
 0x144   : > { %s2721_s18 = sshll.u32 %s2322_s13, 3  ;;  %s2855_s13 = scalar_lea.hbm %s3932_s4, 512 }
 0x145   : > { %s2324_s30 = scalar_lea.hbm %s3932_s4, %s2721_s18 }
 0x146   : > { %s2327_s5 = sshll.u32 %s2324_s30, 4  ;;  %s2328_s5 = int_to_ptr.hbm [resolvable:$true] %s2327_s5 }
 0x147   : > { %v1457_v30 = vpop.f32.mrf.mxu1  ;;  %s2849_s9 = sshra.s32 %s2328_s5, 4  ;;  %s2850_s9 = int_to_ptr.hbm [resolvable:$true] %s2849_s9 }
 0x148   : > { %v1513_v33 = vadd.f32 %v1457_v30, %v811_v23  ;;  %s2851_s10 = scalar_lea.hbm %s2850_s9, 128  ;;  %p2856_p2 = scmp.lt.s32.totalorder %s2850_s9, %s3932_s4 }
 0x149   : > { %v657_v44 = vpop.permute.xlu0 %656  ;;  %v2737_v27 = vld [vmem:[#allocation2 + $0x58] sm:$0xff]  ;;  %v1139_v24 = vpop.permute.xlu2 %1138  ;;  %p2852_p13 = scmp.ne.s32.totalorder %s2850_s9, %s2851_s10  ;;  %p2857_p4 = scmp.lt.s32.totalorder %s2855_s13, %s2851_s10 }
 0x14a   : > { %697 = vst.msk [vmem:[#allocation2 + $0x20] sm:$0xf] %vm688_vm9, %v657_v44  ;;  %v2729_v32 = vld [vmem:[#allocation2 + $0x20] sm:$0xf0]  ;;  %v2190_v35 = vadd.f32 %v2134_v28, %v1513_v33  ;;  %v1822_v39 = vpop.permute.xlu1 %1821  ;;  %2592 = vmatmul.msk.bf16.gmra.mxu1 %vm773_vm10, %v2737_v27 }
 0x14b   : > { %1574 = vst.msk [vmem:[#allocation2 + $0x24] sm:$0xf] %vm232_vm6, %v2608_v31  ;;  %p2853_p0 = pnand %p2852_p13, %p3010_p3  ;;  %p2858_p5 = por %p2857_p4, %p2856_p2 }
 0x14c   : > { %v2242_v41 = vmul.f32 %v3767_v34, %v2190_v35  ;;  %1857 = vst.msk [vmem:[#allocation2 + $0x30] sm:$0xf] %vm516_vm8, %v1822_v39 }
 0x14d   : > { %2025 = vst.msk [vmem:[#allocation2 + $0x30] sm:$0xf] %vm688_vm9, %v1990_v20  ;;  %p2854_p1 = pneg %p2853_p0 }
 0x14e   : > { %v2262_v21 = vadd.f32 %v3774_v38, %v2242_v41  ;;  %1177 = vst.msk [vmem:[#allocation2 + $0x64] sm:$0xf] %vm516_vm8, %v1139_v24 }
 0x14f   : > { %v1459_v45 = vpop.f32.mrf.mxu1  ;;  %p2859_p6 = pnand %p2858_p5, %p2854_p1 }
 0x150   : > { %v2278_v46 = vmax.f32 %v2262_v21, 0.0  ;;  %v1514_v47 = vadd.f32 %v1459_v45, %v813_v29 }
 0x151   : > { %v2450_v25 = vld [vmem:[#allocation2 + $0x20] sm:$0xf]  ;;  %v1816_v48 = vpop.permute.xlu0 %1815  ;;  %v489_v54 = vpop.permute.xlu2 %488 }
 0x152   : > { %1573 = vst.msk [vmem:[#allocation2 + $0x20] sm:$0xf] %vm232_vm6, %v2607_v43  ;;  %v2451_v51 = vor.u32 %v2729_v32, %v2450_v25  ;;  %v2191_v40 = vadd.f32 %v2136_v49, %v1514_v47  ;;  %v1984_v52 = vpop.permute.xlu1 %1983  ;;  %v816_v0 = vpop.f32.mrf.mxu0 }
 0x153   : > { %2294 = vst [vmem:[%s3787_s11] sm:$0xff] %v2278_v46 }
 0x154   : > { %1853 = vst.msk [vmem:[#allocation2 + $0x20] sm:$0xf] %vm516_vm8, %v3744_v13  ;;  %2472 = vmatmul.msk.bf16.gmra.mxu0 %vm773_vm10, %v2451_v51  ;;  %v2243_v55 = vmul.f32 %v3767_v34, %v2191_v40 }
 0x155   : > { %1854 = vst.msk [vmem:[#allocation2 + $0x24] sm:$0xf] %vm516_vm8, %v1816_v48 }
 0x156   : > { %2022 = vst.msk [vmem:[#allocation2 + $0x24] sm:$0xf] %vm688_vm9, %v1984_v52  ;;  %v2263_v37 = vadd.f32 %v3774_v38, %v2243_v55 }
 0x157   : > { %527 = vst.msk [vmem:[#allocation2 + $0x28] sm:$0xf] %vm516_vm8, %v489_v54 }
 0x158   : > { %v2279_v50 = vmax.f32 %v2263_v37, 0.0 }
 0x159   : > { %v1982_v56 = vpop.permute.xlu0 %1981  ;;  %v663_v60 = vpop.permute.xlu2 %662 }
 0x15a   : > { %2021 = vst.msk [vmem:[#allocation2 + $0x20] sm:$0xf] %vm688_vm9, %v1982_v56  ;;  %v1137_v57 = vpop.permute.xlu1 %1136  ;;  %v818_v5 = vpop.f32.mrf.mxu0 }
 0x15b   : > { %2295 = vst [vmem:[%s3787_s11 + $0x8] sm:$0xff] %v2279_v50  ;;  %v841_v56 = vpop.f32.mrf.mxu3 }
 0x15c   : > { %1176 = vst.msk [vmem:[#allocation2 + $0x60] sm:$0xf] %vm516_vm8, %v1137_v57 }
 0x161   : > { %v1992_v61 = vpop.permute.xlu0 %1991  ;;  %v2747_v62 = vld [vmem:[#allocation2 + $0x20] sm:$0xff]  ;;  %v1826_v1 = vpop.permute.xlu2 %1825 }
 0x162   : > { %2026 = vst.msk [vmem:[#allocation2 + $0x34] sm:$0xf] %vm688_vm9, %v1992_v61  ;;  %v1307_v63 = vpop.permute.xlu1 %1306  ;;  %2714 = vmatmul.msk.bf16.gmra.mxu2 %vm773_vm10, %v2747_v62 }
 0x163   : > { %1345 = vst.msk [vmem:[#allocation2 + $0x64] sm:$0xf] %vm688_vm9, %v1307_v63  ;;  %v843_v62 = vpop.f32.mrf.mxu3 }
 0x164   : > { %1859 = vst.msk [vmem:[#allocation2 + $0x38] sm:$0xf] %vm516_vm8, %v1826_v1 }
 0x169   : > { %v1305_v59 = vpop.permute.xlu0 %1304  ;;  %v2749_v3 = vld [vmem:[#allocation2 + $0x30] sm:$0xff]  ;;  %v1988_v7 = vpop.permute.xlu2 %1987 }
 0x16a   : > { %1344 = vst.msk [vmem:[#allocation2 + $0x60] sm:$0xf] %vm688_vm9, %v1305_v59  ;;  %v661_v6 = vpop.permute.xlu1 %660  ;;  %2716 = vmatmul.msk.bf16.vlgmr.msra.gmra.mxu3 %vm773_vm10, %v2749_v3 }
 0x16b   : > { %699 = vst.msk [vmem:[#allocation2 + $0x28] sm:$0xf] %vm688_vm9, %v661_v6  ;;  %v846_v63 = vpop.f32.mrf.mxu3 }
 0x16e   : > { %v2139_v8 = vpop.f32.mrf.mxu2 }
 0x16f   : > { %v1462_v2 = vpop.f32.mrf.mxu1 }
 0x170   : > { %v1515_v11 = vadd.f32 %v1462_v2, %v816_v0 }
 0x171   : > { %v491_v12 = vpop.permute.xlu0 %490  ;;  %v2738_v58 = vld [vmem:[#allocation2 + $0x60] sm:$0xff]  ;;  %v1141_v53 = vpop.permute.xlu2 %1140 }
 0x172   : > { %528 = vst.msk [vmem:[#allocation2 + $0x2c] sm:$0xf] %vm516_vm8, %v491_v12  ;;  %v2454_v13 = vld [vmem:[#allocation2 + $0x28] sm:$0xf]  ;;  %v2192_v14 = vadd.f32 %v2139_v8, %v1515_v11  ;;  %v1820_v15 = vpop.permute.xlu1 %1819  ;;  %2593 = vmatmul.msk.bf16.gmra.mxu1 %vm773_vm10, %v2738_v58 }
 0x173   : > { %700 = vst.msk [vmem:[#allocation2 + $0x2c] sm:$0xf] %vm688_vm9, %v663_v60  ;;  %v3848_v1 = vpop.f32.mrf.mxu3 }
 0x174   : > { %1575 = vst.msk [vmem:[#allocation2 + $0x28] sm:$0xf] %vm232_vm6, %v2609_v9  ;;  %v2244_v16 = vmul.f32 %v3767_v34, %v2192_v14 }
 0x175   : > { %1178 = vst.msk [vmem:[#allocation2 + $0x68] sm:$0xf] %vm516_vm8, %v1141_v53 }
 0x176   : > { %v2264_v17 = vadd.f32 %v3774_v38, %v2244_v16  ;;  %v2141_v23 = vpop.f32.mrf.mxu2 }
 0x177   : > { %v1464_v19 = vpop.f32.mrf.mxu1 }
 0x178   : > { %v2280_v10 = vmax.f32 %v2264_v17, 0.0  ;;  %v1516_v22 = vadd.f32 %v1464_v19, %v818_v5 }
 0x179   : > { %v1818_v36 = vpop.permute.xlu0 %1817  ;;  %v1311_v21 = vpop.permute.xlu2 %1310 }
 0x17a   : > { %v2730_v20 = vld [vmem:[#allocation2 + $0x28] sm:$0xf0]  ;;  %1855 = vst.msk [vmem:[#allocation2 + $0x28] sm:$0xf] %vm516_vm8, %v1818_v36  ;;  %v2193_v28 = vadd.f32 %v2141_v23, %v1516_v22  ;;  %v1986_v30 = vpop.permute.xlu1 %1985  ;;  %v821_v45 = vpop.f32.mrf.mxu0 }
 0x17b   : > { %2296 = vst [vmem:[%s3787_s11 + $0x10] sm:$0xff] %v2280_v10  ;;  %v2455_v31 = vor.u32 %v2730_v20, %v2454_v13 }
 0x17c   : > { %1576 = vst.msk [vmem:[#allocation2 + $0x2c] sm:$0xf] %vm232_vm6, %v2610_v18  ;;  %v2245_v33 = vmul.f32 %v3767_v34, %v2193_v28 }
 0x17d   : > { %1856 = vst.msk [vmem:[#allocation2 + $0x2c] sm:$0xf] %vm516_vm8, %v1820_v15  ;;  %2473 = vmatmul.msk.bf16.gmra.mxu0 %vm773_vm10, %v2455_v31 }
 0x17e   : > { %2024 = vst.msk [vmem:[#allocation2 + $0x2c] sm:$0xf] %vm688_vm9, %v1988_v7  ;;  %v2265_v44 = vadd.f32 %v3774_v38, %v2245_v33 }
 0x17f   : > { %2023 = vst.msk [vmem:[#allocation2 + $0x28] sm:$0xf] %vm688_vm9, %v1986_v30 }
 0x180   : > { %v2281_v27 = vmax.f32 %v2265_v44, 0.0 }
 0x181   : > { %v1828_v32 = vpop.permute.xlu0 %1827 }
 0x182   : > { %1860 = vst.msk [vmem:[#allocation2 + $0x3c] sm:$0xf] %vm516_vm8, %v1828_v32  ;;  %v1996_v35 = vpop.permute.xlu1 %1995  ;;  %v823_v52 = vpop.f32.mrf.mxu0 }
 0x183   : > { %2297 = vst [vmem:[%s3787_s11 + $0x18] sm:$0xff] %v2281_v27 }
 0x184   : > { %2028 = vst.msk [vmem:[#allocation2 + $0x3c] sm:$0xf] %vm688_vm9, %v1996_v35 }
 0x186   : > { %v2748_v39 = vld [vmem:[#allocation2 + $0x28] sm:$0xff] }
 0x187   : > { %2715 = vmatmul.msk.bf16.gmra.mxu2 %vm773_vm10, %v2748_v39  ;;  %v1487_v6 = vpop.f32.mrf.mxu3 }
 0x188   : > { %v1525_v19 = vadd.f32 %v1487_v6, %v841_v56 }
 0x189   : > { %v1994_v24 = vpop.permute.xlu0 %1993 }
 0x18a   : > { %2027 = vst.msk [vmem:[#allocation2 + $0x38] sm:$0xf] %vm688_vm9, %v1994_v24  ;;  %v1309_v41 = vpop.permute.xlu1 %1308 }
 0x18b   : > { %1346 = vst.msk [vmem:[#allocation2 + $0x68] sm:$0xf] %vm688_vm9, %v1309_v41 }
 0x18f   : > { %v1489_v14 = vpop.f32.mrf.mxu3 }
 0x190   : > { %v1526_v33 = vadd.f32 %v1489_v14, %v843_v62 }
 0x191   : > { %v1143_v43 = vpop.permute.xlu0 %1142  ;;  %v2750_v29 = vld [vmem:[#allocation2 + $0x38] sm:$0xff] }
 0x192   : > { %1179 = vst.msk [vmem:[#allocation2 + $0x6c] sm:$0xf] %vm516_vm8, %v1143_v43  ;;  %2717 = vmatmul.msk.bf16.gmra.mxu3 %vm773_vm10, %v2750_v29 }
 0x193   : > { %1347 = vst.msk [vmem:[#allocation2 + $0x6c] sm:$0xf] %vm688_vm9, %v1311_v21 }
 0x195   : > { %v2144_v46 = vpop.f32.mrf.mxu2 }
 0x198   : > { %v1467_v25 = vpop.f32.mrf.mxu1 }
 0x199   : > { %v1517_v47 = vadd.f32 %v1467_v25, %v821_v45 }
 0x19a   : > { %v2739_v48 = vld [vmem:[#allocation2 + $0x68] sm:$0xff] }
 0x19b   : > { %v2194_v49 = vadd.f32 %v2144_v46, %v1517_v47  ;;  %2594 = vmatmul.msk.bf16.gmra.mxu1 %vm773_vm10, %v2739_v48 }
 0x19d   : > { %v2246_v51 = vmul.f32 %v3767_v34, %v2194_v49  ;;  %v2146_v37 = vpop.f32.mrf.mxu2 }
 0x19f   : > { %v2266_v40 = vadd.f32 %v3774_v38, %v2246_v51 }
 0x1a0   : > { %v1469_v54 = vpop.f32.mrf.mxu1 }
 0x1a1   : > { %v2282_v55 = vmax.f32 %v2266_v40, 0.0  ;;  %v1518_v42 = vadd.f32 %v1469_v54, %v823_v52 }
 0x1a3   : > { %2298 = vst [vmem:[%s3787_s11 + $0x20] sm:$0xff] %v2282_v55  ;;  %v2195_v50 = vadd.f32 %v2146_v37, %v1518_v42 }
 0x1a5   : > { %v2247_v57 = vmul.f32 %v3767_v34, %v2195_v50 }
 0x1a7   : > { %v2267_v60 = vadd.f32 %v3774_v38, %v2247_v57 }
 0x1a9   : > { %v2283_v61 = vmax.f32 %v2267_v60, 0.0  ;;  %v826_v59 = vpop.f32.mrf.mxu0 }
 0x1ab   : > { %2299 = vst [vmem:[%s3787_s11 + $0x28] sm:$0xff] %v2283_v61 }
 0x1b1   : > { %v828_v2 = vpop.f32.mrf.mxu0 }
 0x1b9   : > { %v2149_v3 = vpop.f32.mrf.mxu2 }
 0x1bd   : > { %v1492_v17 = vpop.f32.mrf.mxu3 }
 0x1be   : > { %v1527_v40 = vadd.f32 %v1492_v17, %v846_v63 }
 0x1c1   : > { %v2151_v58 = vpop.f32.mrf.mxu2 }
 0x1c5   : > { %v1494_v5 = vpop.f32.mrf.mxu3 }
 0x1c6   : > { %v1528_v61 = vadd.f32 %v1494_v5, %v3848_v1 }
 0x1c7   : > { %v1472_v26 = vpop.f32.mrf.mxu1 }
 0x1c8   : > { %v1519_v4 = vadd.f32 %v1472_v26, %v826_v59 }
 0x1ca   : > { %v2196_v7 = vadd.f32 %v2149_v3, %v1519_v4 }
 0x1cc   : > { %v2248_v0 = vmul.f32 %v3767_v34, %v2196_v7 }
 0x1ce   : > { %v2268_v8 = vadd.f32 %v3774_v38, %v2248_v0 }
 0x1cf   : > { %v1474_v9 = vpop.f32.mrf.mxu1 }
 0x1d0   : > { %v2284_v11 = vmax.f32 %v2268_v8, 0.0  ;;  %v1520_v12 = vadd.f32 %v1474_v9, %v828_v2 }
 0x1d1   : > { %v831_v10 = vpop.f32.mrf.mxu0 }
 0x1d2   : > { %2300 = vst [vmem:[%s3787_s11 + $0x30] sm:$0xff] %v2284_v11  ;;  %v2197_v13 = vadd.f32 %v2151_v58, %v1520_v12 }
 0x1d4   : > { %v2249_v15 = vmul.f32 %v3767_v34, %v2197_v13 }
 0x1d6   : > { %v2269_v53 = vadd.f32 %v3774_v38, %v2249_v15 }
 0x1d8   : > { %v2285_v16 = vmax.f32 %v2269_v53, 0.0 }
 0x1d9   : > { %v833_v24 = vpop.f32.mrf.mxu0 }
 0x1da   : > { %2301 = vst [vmem:[%s3787_s11 + $0x38] sm:$0xff] %v2285_v16 }
 0x1e5   : > { %v2154_v36 = vpop.f32.mrf.mxu2 }
 0x1ed   : > { %v2164_v18 = vpop.f32.mrf.mxu3  ;;  %v2156_v45 = vpop.f32.mrf.mxu2 }
 0x1ee   : > { %v2202_v22 = vadd.f32 %v2164_v18, %v1525_v19 }
 0x1ef   : > { %v1477_v20 = vpop.f32.mrf.mxu1 }
 0x1f0   : > { %v2254_v23 = vmul.f32 %v3767_v34, %v2202_v22  ;;  %v1521_v28 = vadd.f32 %v1477_v20, %v831_v10 }
 0x1f2   : > { %v2274_v30 = vadd.f32 %v3774_v38, %v2254_v23  ;;  %v2198_v31 = vadd.f32 %v2154_v36, %v1521_v28 }
 0x1f4   : > { %v2290_v44 = vmax.f32 %v2274_v30, 0.0  ;;  %v2250_v27 = vmul.f32 %v3767_v34, %v2198_v31 }
 0x1f5   : > { %v2166_v32 = vpop.f32.mrf.mxu3 }
 0x1f6   : > { %2306 = vst [vmem:[%s3787_s11 + $0x60] sm:$0xff] %v2290_v44  ;;  %v2270_v35 = vadd.f32 %v3774_v38, %v2250_v27  ;;  %v2203_v39 = vadd.f32 %v2166_v32, %v1526_v33 }
 0x1f7   : > { %v1479_v41 = vpop.f32.mrf.mxu1 }
 0x1f8   : > { %v2286_v21 = vmax.f32 %v2270_v35, 0.0  ;;  %v2255_v43 = vmul.f32 %v3767_v34, %v2203_v39  ;;  %v1522_v29 = vadd.f32 %v1479_v41, %v833_v24 }
 0x1fa   : > { %2302 = vst [vmem:[%s3787_s11 + $0x40] sm:$0xff] %v2286_v21  ;;  %v2275_v46 = vadd.f32 %v3774_v38, %v2255_v43  ;;  %v2199_v25 = vadd.f32 %v2156_v45, %v1522_v29  ;;  %v836_v54 = vpop.f32.mrf.mxu0 }
 0x1fc   : > { %v2291_v47 = vmax.f32 %v2275_v46, 0.0  ;;  %v2251_v48 = vmul.f32 %v3767_v34, %v2199_v25 }
 0x1fe   : > { %2307 = vst [vmem:[%s3787_s11 + $0x68] sm:$0xff] %v2291_v47  ;;  %v2271_v49 = vadd.f32 %v3774_v38, %v2251_v48 }
 0x200   : > { %v2287_v51 = vmax.f32 %v2271_v49, 0.0 }
 0x202   : > { %2303 = vst [vmem:[%s3787_s11 + $0x48] sm:$0xff] %v2287_v51  ;;  %v838_v4 = vpop.f32.mrf.mxu0 }
 0x20a   : > { %v2159_v42 = vpop.f32.mrf.mxu2 }
 0x212   : > { %v2161_v8 = vpop.f32.mrf.mxu2 }
 0x215   : > { %v2169_v52 = vpop.f32.mrf.mxu3 }
 0x216   : > { %v2204_v55 = vadd.f32 %v2169_v52, %v1527_v40 }
 0x218   : > { %v2256_v37 = vmul.f32 %v3767_v34, %v2204_v55  ;;  %v1482_v50 = vpop.f32.mrf.mxu1 }
 0x219   : > { %v1523_v56 = vadd.f32 %v1482_v50, %v836_v54 }
 0x21a   : > { %v2276_v57 = vadd.f32 %v3774_v38, %v2256_v37 }
 0x21b   : > { %v2200_v60 = vadd.f32 %v2159_v42, %v1523_v56 }
 0x21c   : > { %v2292_v62 = vmax.f32 %v2276_v57, 0.0 }
 0x21d   : > { %v2252_v63 = vmul.f32 %v3767_v34, %v2200_v60  ;;  %v2171_v59 = vpop.f32.mrf.mxu3 }
 0x21e   : > { %2308 = vst [vmem:[%s3787_s11 + $0x70] sm:$0xff] %v2292_v62  ;;  %v2205_v3 = vadd.f32 %v2171_v59, %v1528_v61 }
 0x21f   : > { %v2272_v26 = vadd.f32 %v3774_v38, %v2252_v63 }
 0x220   : > { %v2257_v6 = vmul.f32 %v3767_v34, %v2205_v3  ;;  %v1484_v7 = vpop.f32.mrf.mxu1 }
 0x221   : > { %v2288_v0 = vmax.f32 %v2272_v26, 0.0  ;;  %v1524_v1 = vadd.f32 %v1484_v7, %v838_v4 }
 0x222   : > { %v2277_v2 = vadd.f32 %v3774_v38, %v2257_v6 }
 0x223   : > { %2304 = vst [vmem:[%s3787_s11 + $0x50] sm:$0xff] %v2288_v0  ;;  %v2201_v9 = vadd.f32 %v2161_v8, %v1524_v1 }
 0x224   : > { %v2293_v11 = vmax.f32 %v2277_v2, 0.0 }
 0x225   : > { %v2253_v12 = vmul.f32 %v3767_v34, %v2201_v9 }
 0x226   : > { %2309 = vst [vmem:[%s3787_s11 + $0x78] sm:$0xff] %v2293_v11 }
 0x227   : > { %v2273_v58 = vadd.f32 %v3774_v38, %v2253_v12 }
 0x229   : > { %v2289_v13 = vmax.f32 %v2273_v58, 0.0 }
 0x22b   : > { %2305 = vst [vmem:[%s3787_s11 + $0x58] sm:$0xff] %v2289_v13 }
 0x22c   : > { %2862 = shalt.err (!%p2859_p6)
}
 0x22d   : > { %s2933_s6 = smov 128  }
 0x22e   : > { %2759 = dma.vmem_to_hbm [thread:$0]  (%p3010_p3), %s2326_s23, 2048, %s2328_s5, %s2311_s8, %s2933_s6, %s2933_s6, %s2932_s24  }
 0x22f PF: > { %p2765_p7 = scmp.ge.s32.totalorder %s2929_s22, 2  ;;  %s2342_s11 = sand.u32 1, %s2901_s15  }
 0x230   : > { %s2343_s27 = scalar_lea.sflag [#allocation5], %s2342_s11 }
 0x231   : > { %p2762_p9 = pnand %p2765_p7, %p3019_p8 }
 0x233   : > { %p2763_p10 = pneg %p2762_p9 }
 0x235   : > { %2896 = dma.done.wait (%p2763_p10), %s2343_s27, 2048  }
 0x236   : > { %2898 = vsyncadd (%p2763_p10), %s2343_s27, 4294965248  ;;  %s17_s22 = sadd.s32 1, %s2929_s22   ;;  %s3939_s15 = smov %s2905_s16 }
 0x237   : > { %p14_p11 = scmp.ge.s32.totalorder %s17_s22, 6   ;;  %s3940_s16 = smov %s2909_s17 }
 0x238   : > { %s3941_s17 = smov %s3028_s7  ;;  %s3942_s18 = smov %s2921_s20 }
 0x239   : > { %s3943_s19 = smov %s2925_s21  ;;  %s3944_s20 = smov %s3947_s25 }
 0x23a   : > { %s3945_s21 = smov %s3951_s26  ;;  %16 = sbr.rel (!%p14_p11) target bundleno = 5 (0x5), region = 77 }
 0x23f   :  { %2349 = vsyncpa [#allocation5], 1 }
 0x240   :  { %2351 = vsyncpa [#allocation5 + $0x1], 1 }

</bundles_post_ra>
